<compile_context>
chip_gen: v7x
topology: tpu7x:2x2x1
jax: 0.10.0
libtpu: 0.0.40
codegen_flags: <defaults>
</compile_context>

<pallas_src>
import functools

import jax
import jax.numpy as jnp
from jax import lax
from jax.experimental import pallas as pl
from jax.experimental.pallas import tpu as pltpu

_LANE = 128
_MIB = 1 << 20


def _device_kind() -> str:
    try:
        return jax.devices()[0].device_kind.lower()
    except Exception:
        return ""


def _generation_config():
    """(exp_dtype, vmem_cap_bytes, tq_candidates) for the local TPU generation."""
    kind = _device_kind()
    is_v7 = ("v7" in kind) or ("tpu7" in kind) or ("7x" in kind)
    is_v6 = "v6" in kind
    is_v5 = "v5" in kind
    # bf16 EUP/VPU exist on v6e/v7x only; keep the exponent in f32 on v5 & older.
    exp_dtype = jnp.bfloat16 if (is_v6 or is_v7) else jnp.float32
    if is_v7:
        vmem_cap = 56 * _MIB               # 64 MiB physical per TensorCore
        tq_cands = (256, 128)              # native 256x256 MXU tile
    elif is_v6:
        vmem_cap = 100 * _MIB              # 128 MiB physical
        tq_cands = (256, 128)
    elif is_v5:
        vmem_cap = 100 * _MIB              # 128 MiB physical; larger tq amortizes
        tq_cands = (512, 256, 128)         # the ~0.35us/step grid overhead
    else:
        vmem_cap = 64 * _MIB               # unknown generation: stay conservative
        tq_cands = (256, 128)
    return exp_dtype, vmem_cap, tq_cands


def _vmem_estimate(ck, n_pad, tq, exp_bytes):
    """Exact-ish per-buffer VMEM requirement of the kernel (bytes)."""
    blocks = 2 * 2 * (ck * tq * 2)            # f, h query tiles, double-buffered, bf16
    blocks += 2 * (ck * n_pad * 2)            # g (keys), resident per batch, bf16
    blocks += 2 * (ck * n_pad * 4)            # sa output accumulator block, f32
    temps = tq * n_pad * (4 + exp_bytes + 2)  # s (f32) + p + normalized p (bf16)
    temps += ck * n_pad * 4                   # sa_t before the accumulate
    temps += 4 * tq * 4                       # m / l / inv_l strips
    return blocks + temps


def _sa_kernel(f_ref, g_ref, h_ref, sa_ref, *, n_real, n_pad, exp_dtype):
    """Grid = (B, N_pad // tq): query-tiled attention, exact per-row softmax.

    f_ref : (Ck, tq)     bf16  query projection tile
    g_ref : (Ck, N_pad)  bf16  key projection (resident per batch)
    h_ref : (Ck, tq)     bf16  value projection tile
    sa_ref: (Ck, N_pad)  f32   output block, resident per batch (accumulator)
    """
    i = pl.program_id(1)

    # scores s[q, k] = sum_c f[c, q] * g[c, k]   (lhs-transposed MXU matmul)
    s = lax.dot_general(f_ref[...], g_ref[...],
                        dimension_numbers=(((0,), (0,)), ((), ())),
                        preferred_element_type=jnp.float32)          # (tq, N_pad) f32

    if n_pad != n_real:  # static: mask zero-padded key columns out of the softmax
        key_idx = lax.broadcasted_iota(jnp.int32, s.shape, 1)
        s = jnp.where(key_idx < n_real, s, -1e30)

    # exact softmax over the full key axis for this query tile
    m = jnp.max(s, axis=-1, keepdims=True)                           # (tq, 1) f32
    p = jnp.exp((s - m).astype(exp_dtype))                           # (tq, N_pad)
    l = jnp.sum(p, axis=-1, keepdims=True, dtype=jnp.float32)        # (tq, 1) f32
    inv_l = pl.reciprocal(l, approx=True)                            # (tq, 1) f32
    p_n = (p * inv_l.astype(exp_dtype)).astype(jnp.bfloat16)         # (tq, N_pad) bf16

    # sa[c, k] += sum_q h[c, q] * p_n[q, k]
    sa_t = jnp.dot(h_ref[...], p_n, preferred_element_type=jnp.float32)  # (Ck, N_pad)

    @pl.when(i == 0)
    def _first():
        sa_ref[...] = sa_t

    @pl.when(i > 0)
    def _rest():
        sa_ref[...] += sa_t


def hybrid_attention(x_nchw, params, *, tq=None):
    """Forward pass of hybrid_attention (Spatial_Attention -> Self_Attention).

    x_nchw: (B, C, H, W) float32.  Returns (B, C, H, W) float32.
    """
    B, C, H, W = x_nchw.shape
    N = H * W
    Ck = params["w_f"].shape[0]
    n_pad = ((N + _LANE - 1) // _LANE) * _LANE

    exp_dtype, vmem_cap, tq_cands = _generation_config()

    # ---- XLA prologue: spatial gate + f/g/h 1x1 convs (bf16 MXU, f32 accum) ----
    x = x_nchw.reshape(B, C, N).astype(jnp.float32)
    act = jnp.einsum("oc,bcn->bon", params["w_sp"].astype(jnp.float32), x)
    act = act + params["b_sp"].reshape(1, 1, 1)
    y = (x * act).astype(jnp.bfloat16)                                # (B, C, N)

    def proj(w, b):
        o = jnp.einsum("kc,bcn->bkn", w.astype(jnp.bfloat16), y,
                       preferred_element_type=jnp.float32)
        return (o + b.reshape(1, -1, 1)).astype(jnp.bfloat16)

    f = proj(params["w_f"], params["b_f"])
    g = proj(params["w_g"], params["b_g"])
    h = proj(params["w_h"], params["b_h"])
    if n_pad != N:
        # zero-pad: padded queries then contribute exactly 0; padded keys are
        # masked to -1e30 inside the kernel.
        pad = ((0, 0), (0, 0), (0, n_pad - N))
        f, g, h = jnp.pad(f, pad), jnp.pad(g, pad), jnp.pad(h, pad)

    # ---- generation-aware tile size + VMEM budget ----
    exp_bytes = 2 if exp_dtype == jnp.bfloat16 else 4
    if tq is None:
        fitting = [c for c in tq_cands
                   if n_pad % c == 0
                   and int(1.3 * _vmem_estimate(Ck, n_pad, c, exp_bytes)) <= vmem_cap]
        tq = fitting[0] if fitting else _LANE
    assert n_pad % tq == 0
    est = _vmem_estimate(Ck, n_pad, tq, exp_bytes)
    vmem_limit = int(min(vmem_cap, max(int(1.3 * est), 32 * _MIB)))

    cost = pl.CostEstimate(
        flops=int(4 * B * Ck * n_pad * n_pad),
        transcendentals=int(B * n_pad * n_pad),
        bytes_accessed=int(B * Ck * n_pad * (2 + 2 + 2 + 4)))

    kernel = functools.partial(_sa_kernel, n_real=N, n_pad=n_pad, exp_dtype=exp_dtype)

    # TODO(synk): with B == 1 on v7x only one TensorCore is used (the only
    # "parallel" axis is the batch); split the query reduction across cores
    # (per-core partial sa + cross-core add) if single-image v7x latency matters.
    sa = pl.pallas_call(
        kernel,
        out_shape=jax.ShapeDtypeStruct((B, Ck, n_pad), jnp.float32),
        grid=(B, n_pad // tq),
        in_specs=[
            pl.BlockSpec((None, Ck, tq), lambda b, i: (b, 0, i)),     # f query tile
            pl.BlockSpec((None, Ck, n_pad), lambda b, i: (b, 0, 0)),  # g keys, resident
            pl.BlockSpec((None, Ck, tq), lambda b, i: (b, 0, i)),     # h value tile
        ],
        out_specs=pl.BlockSpec((None, Ck, n_pad), lambda b, i: (b, 0, 0)),
        compiler_params=pltpu.CompilerParams(
            dimension_semantics=("parallel", "arbitrary"),
            vmem_limit_bytes=vmem_limit),
        cost_estimate=cost,
    )(f, g, h)

    if n_pad != N:
        sa = sa[:, :, :N]

    # ---- XLA epilogue: v 1x1 conv + gamma (f32; exactly zero when gamma == 0) ----
    v = jnp.einsum("ck,bkn->bcn", params["w_v"].astype(jnp.float32), sa)
    v = v + params["b_v"].reshape(1, C, 1)
    out = params["gamma"].reshape(()) * v
    return out.reshape(B, C, H, W)


def reference_forward(x_nchw, params, *, kernel_precision=False, exp_dtype=jnp.float32):
    """Pure-JAX mirror of the PyTorch forward.

    kernel_precision=True mirrors the kernel's numerics (bf16 projection inputs,
    bf16 MXU operands, f32 accumulation / softmax statistics) so the comparison
    isolates the Pallas implementation rather than bf16 rounding.
    """
    B, C, H, W = x_nchw.shape
    N = H * W
    x = x_nchw.reshape(B, C, N).astype(jnp.float32)
    act = jnp.einsum("oc,bcn->bon", params["w_sp"], x) + params["b_sp"].reshape(1, 1, 1)
    y = x * act
    if kernel_precision:
        yb = y.astype(jnp.bfloat16)

        def proj(w, b):
            o = jnp.einsum("kc,bcn->bkn", w.astype(jnp.bfloat16), yb,
                           preferred_element_type=jnp.float32)
            return (o + b.reshape(1, -1, 1)).astype(jnp.bfloat16)

        f = proj(params["w_f"], params["b_f"])
        g = proj(params["w_g"], params["b_g"])
        h = proj(params["w_h"], params["b_h"])
        s = jnp.einsum("bki,bkj->bij", f, g, preferred_element_type=jnp.float32)
        m = jnp.max(s, axis=-1, keepdims=True)
        p = jnp.exp((s - m).astype(exp_dtype))
        l = jnp.sum(p, axis=-1, keepdims=True, dtype=jnp.float32)
        p = (p * (1.0 / l).astype(exp_dtype)).astype(jnp.bfloat16)
        sa = jnp.einsum("bki,bij->bkj", h, p, preferred_element_type=jnp.float32)
    else:
        def proj(w, b):
            return jnp.einsum("kc,bcn->bkn", w, y) + b.reshape(1, -1, 1)

        f = proj(params["w_f"], params["b_f"])
        g = proj(params["w_g"], params["b_g"])
        h = proj(params["w_h"], params["b_h"])
        s = jnp.einsum("bki,bkj->bij", f, g)
        p = jax.nn.softmax(s, axis=-1)
        sa = jnp.einsum("bki,bij->bkj", h, p)
    v = jnp.einsum("ck,bkn->bcn", params["w_v"], sa) + params["b_v"].reshape(1, C, 1)
    out = params["gamma"].reshape(()) * v
    return out.reshape(B, C, H, W)


def _make_params(key, C, Ck):
    keys = jax.random.split(key, 8)

    def xavier(k, out_c, in_c):
        bound = (6.0 / (in_c + out_c)) ** 0.5
        return jax.random.uniform(k, (out_c, in_c), jnp.float32, -bound, bound)

    return {
        # Spatial_Attention: Conv2d(C, 1, 1) (default init; synthetic here).
        "w_sp": xavier(keys[0], 1, C),
        "b_sp": 0.1 * jax.random.normal(keys[1], (1,), jnp.float32),
        # Self_Attention f/g/h: Conv2d(C, C//8, 1), xavier weight, zero bias (init_conv).
        "w_f": xavier(keys[2], Ck, C), "b_f": jnp.zeros((Ck,), jnp.float32),
        "w_g": xavier(keys[3], Ck, C), "b_g": jnp.zeros((Ck,), jnp.float32),
        "w_h": xavier(keys[4], Ck, C), "b_h": jnp.zeros((Ck,), jnp.float32),
        # v: Conv2d(C//8, C, 1) with bias (module default init).
        "w_v": xavier(keys[5], C, Ck),
        "b_v": 0.1 * jax.random.normal(keys[6], (C,), jnp.float32),
        # gamma is zero-initialized in the module.
        "gamma": jnp.zeros((1,), jnp.float32),
    }


if __name__ == "__main__":
    exp_dtype, _, _ = _generation_config()
    kx, kp, kx2, kp2 = jax.random.split(jax.random.PRNGKey(0), 4)

    # ---- case 1: B=2, C=64, 16x16 (N=256, no padding) ----
    B, C, H, W = 2, 64, 16, 16
    Ck = C // 8
    x = 0.75 * jax.random.normal(kx, (B, C, H, W), dtype=jnp.float32)
    params = _make_params(kp, C, Ck)

    # gamma = 0 (the module's init): output must be exactly zero.
    out0 = jax.block_until_ready(hybrid_attention(x, params))
    assert out0.shape == (B, C, H, W)
    assert bool(jnp.all(out0 == 0.0)), "gamma=0 must give an exactly-zero output"
    assert jnp.allclose(out0, reference_forward(x, params), atol=1e-6)

    # gamma != 0: full spatial-gate + self-attention path.
    params_nz = dict(params, gamma=jnp.array([0.7], jnp.float32))
    out = jax.block_until_ready(hybrid_attention(x, params_nz))

    # primary check: reference with matching (bf16-MXU) precision.
    ref_k = reference_forward(x, params_nz, kernel_precision=True, exp_dtype=exp_dtype)
    err = jnp.abs(out - ref_k)
    assert float(jnp.mean(err)) < 1e-2, f"mean err {float(jnp.mean(err))}"
    assert jnp.allclose(out, ref_k, atol=5e-2, rtol=5e-2), \
        f"max err {float(jnp.max(err))}"

    # coarse sanity against the strict f32 reference (bounds bf16 rounding).
    ref32 = reference_forward(x, params_nz)
    rel_l2 = float(jnp.linalg.norm(out - ref32) / (jnp.linalg.norm(ref32) + 1e-12))
    assert rel_l2 < 0.2, f"rel L2 vs f32 reference {rel_l2}"

    # ---- case 2: ragged spatial size 9x9 (N=81 -> padded to 128, key-mask path) ----
    B2, C2, H2, W2 = 1, 64, 9, 9
    Ck2 = C2 // 8
    x2 = 0.75 * jax.random.normal(kx2, (B2, C2, H2, W2), dtype=jnp.float32)
    params2 = dict(_make_params(kp2, C2, Ck2), gamma=jnp.array([0.5], jnp.float32))
    out2 = jax.block_until_ready(hybrid_attention(x2, params2))
    ref2 = reference_forward(x2, params2, kernel_precision=True, exp_dtype=exp_dtype)
    assert jnp.allclose(out2, ref2, atol=5e-2, rtol=5e-2), \
        f"padded-path max err {float(jnp.max(jnp.abs(out2 - ref2)))}"

    print("KERNEL_OK")
</pallas_src>

<mosaic_0001>
module attributes {stable_mosaic.version = 11 : i64} {
  func.func @_sa_kernel(%arg0: i32, %arg1: i32, %arg2: memref<1x8x256xbf16, #tpu.memory_space<vmem>>, %arg3: memref<1x8x256xbf16, #tpu.memory_space<vmem>>, %arg4: memref<1x8x256xbf16, #tpu.memory_space<vmem>>, %arg5: memref<1x8x256xf32, #tpu.memory_space<vmem>>) attributes {dimension_semantics = [#tpu.dimension_semantics<parallel>, #tpu.dimension_semantics<arbitrary>], iteration_bounds = array<i64: 2, 1>, scalar_prefetch = 0 : i64, scratch_operands = 0 : i64, tpu.core_type = #tpu.core_type<tc>, window_params = [{transform_indices = @transform_0, window_bounds = array<i64: 1, 8, 256>}, {transform_indices = @transform_1, window_bounds = array<i64: 1, 8, 256>}, {transform_indices = @transform_2, window_bounds = array<i64: 1, 8, 256>}, {transform_indices = @transform_3, window_bounds = array<i64: 1, 8, 256>}]} {
    %c0 = arith.constant 0 : index
    %c0_0 = arith.constant 0 : index
    %c0_1 = arith.constant 0 : index
    %0 = vector.load %arg2[%c0, %c0_0, %c0_1] : memref<1x8x256xbf16, #tpu.memory_space<vmem>>, vector<1x8x256xbf16>
    %1 = vector.shape_cast %0 : vector<1x8x256xbf16> to vector<8x256xbf16>
    %c0_2 = arith.constant 0 : index
    %c0_3 = arith.constant 0 : index
    %c0_4 = arith.constant 0 : index
    %2 = vector.load %arg3[%c0_2, %c0_3, %c0_4] : memref<1x8x256xbf16, #tpu.memory_space<vmem>>, vector<1x8x256xbf16>
    %3 = vector.shape_cast %2 : vector<1x8x256xbf16> to vector<8x256xbf16>
    %cst = arith.constant dense<0.000000e+00> : vector<256x256xf32>
    %4 = tpu.matmul %1, %3, %cst {dimension_numbers = #tpu.dot_dimension_numbers<[0], [0], [1], [1], [0, 1, 1, 1], [], []>} : vector<8x256xbf16>, vector<8x256xbf16>, vector<256x256xf32> -> vector<256x256xf32>
    %cst_5 = arith.constant dense<0xFF800000> : vector<256xf32>
    %5 = vector.multi_reduction <maximumf>, %4, %cst_5 [1] : vector<256x256xf32> to vector<256xf32>
    %6 = vector.shape_cast %5 : vector<256xf32> to vector<256x1xf32>
    %7 = vector.broadcast %6 : vector<256x1xf32> to vector<256x256xf32>
    %8 = arith.subf %4, %7 : vector<256x256xf32>
    %9 = math.exp %8 : vector<256x256xf32>
    %cst_6 = arith.constant dense<0.000000e+00> : vector<256xf32>
    %10 = vector.multi_reduction <add>, %9, %cst_6 [1] : vector<256x256xf32> to vector<256xf32>
    %11 = vector.shape_cast %10 : vector<256xf32> to vector<256x1xf32>
    %12 = tpu.reciprocal %11 {approx = true} : vector<256x1xf32> -> vector<256x1xf32>
    %13 = vector.broadcast %12 : vector<256x1xf32> to vector<256x256xf32>
    %14 = arith.mulf %9, %13 : vector<256x256xf32>
    %15 = arith.truncf %14 : vector<256x256xf32> to vector<256x256xbf16>
    %c0_7 = arith.constant 0 : index
    %c0_8 = arith.constant 0 : index
    %c0_9 = arith.constant 0 : index
    %16 = vector.load %arg4[%c0_7, %c0_8, %c0_9] : memref<1x8x256xbf16, #tpu.memory_space<vmem>>, vector<1x8x256xbf16>
    %17 = vector.shape_cast %16 : vector<1x8x256xbf16> to vector<8x256xbf16>
    %cst_10 = arith.constant dense<0.000000e+00> : vector<8x256xf32>
    %18 = tpu.matmul %17, %15, %cst_10 {dimension_numbers = #tpu.dot_dimension_numbers<[1], [0], [0], [1], [0, 0, 1, 1], [], []>} : vector<8x256xbf16>, vector<256x256xbf16>, vector<8x256xf32> -> vector<8x256xf32>
    %c0_i32 = arith.constant 0 : i32
    %19 = arith.cmpi eq, %arg1, %c0_i32 : i32
    %20 = arith.extui %19 : i1 to i32
    %c0_i32_11 = arith.constant 0 : i32
    %21 = arith.cmpi ne, %20, %c0_i32_11 : i32
    scf.if %21 {
      %c0_14 = arith.constant 0 : index
      %c0_15 = arith.constant 0 : index
      %c0_16 = arith.constant 0 : index
      %25 = vector.load %arg5[%c0_14, %c0_15, %c0_16] : memref<1x8x256xf32, #tpu.memory_space<vmem>>, vector<1x8x256xf32>
      %26 = vector.shape_cast %25 : vector<1x8x256xf32> to vector<8x256xf32>
      %27 = vector.shape_cast %18 : vector<8x256xf32> to vector<1x8x256xf32>
      tpu.vector_store %arg5[%c0_14, %c0_15, %c0_16], %27 {strides = array<i32>} : memref<1x8x256xf32, #tpu.memory_space<vmem>>, vector<1x8x256xf32>,
    } else {
    }
    %c0_i32_12 = arith.constant 0 : i32
    %22 = arith.cmpi sgt, %arg1, %c0_i32_12 : i32
    %23 = arith.extui %22 : i1 to i32
    %c0_i32_13 = arith.constant 0 : i32
    %24 = arith.cmpi ne, %23, %c0_i32_13 : i32
    scf.if %24 {
      %c0_14 = arith.constant 0 : index
      %c0_15 = arith.constant 0 : index
      %c0_16 = arith.constant 0 : index
      %25 = vector.load %arg5[%c0_14, %c0_15, %c0_16] : memref<1x8x256xf32, #tpu.memory_space<vmem>>, vector<1x8x256xf32>
      %26 = vector.shape_cast %25 : vector<1x8x256xf32> to vector<8x256xf32>
      %27 = arith.addf %26, %18 : vector<8x256xf32>
      %c0_17 = arith.constant 0 : index
      %c0_18 = arith.constant 0 : index
      %c0_19 = arith.constant 0 : index
      %28 = vector.load %arg5[%c0_17, %c0_18, %c0_19] : memref<1x8x256xf32, #tpu.memory_space<vmem>>, vector<1x8x256xf32>
      %29 = vector.shape_cast %28 : vector<1x8x256xf32> to vector<8x256xf32>
      %30 = vector.shape_cast %27 : vector<8x256xf32> to vector<1x8x256xf32>
      tpu.vector_store %arg5[%c0_17, %c0_18, %c0_19], %30 {strides = array<i32>} : memref<1x8x256xf32, #tpu.memory_space<vmem>>, vector<1x8x256xf32>,
    } else {
    }
    return
  }
  func.func @transform_0(%arg0: i32, %arg1: i32) -> (i32, i32, i32) {
    %c0_i32 = arith.constant 0 : i32
    %c0_i32_0 = arith.constant 0 : i32
    return %arg0, %c0_i32, %arg1 : i32, i32, i32
  }
  func.func @transform_1(%arg0: i32, %arg1: i32) -> (i32, i32, i32) {
    %c0_i32 = arith.constant 0 : i32
    %c0_i32_0 = arith.constant 0 : i32
    %c0_i32_1 = arith.constant 0 : i32
    return %arg0, %c0_i32, %c0_i32_0 : i32, i32, i32
  }
  func.func @transform_2(%arg0: i32, %arg1: i32) -> (i32, i32, i32) {
    %c0_i32 = arith.constant 0 : i32
    %c0_i32_0 = arith.constant 0 : i32
    return %arg0, %c0_i32, %arg1 : i32, i32, i32
  }
  func.func @transform_3(%arg0: i32, %arg1: i32) -> (i32, i32, i32) {
    %c0_i32 = arith.constant 0 : i32
    %c0_i32_0 = arith.constant 0 : i32
    %c0_i32_1 = arith.constant 0 : i32
    return %arg0, %c0_i32, %c0_i32_0 : i32, i32, i32
  }
}

</mosaic_0001>

<bundles_post_ra>
// kernel: tpu_custom_call.1
= control target key start
LH: loop header
LB: loop body
LE: loop exit
PB: predicated region body
PF: predicated region fallthrough
CT: control target
= control target key end

     0   :  { %s2619_s0 = inlined_call_operand.hbm [shape: bf16[2,8,256], index: 0, kind: input, shape index: {}]   ;;  %s2620_s1 = inlined_call_operand.hbm [shape: bf16[2,8,256], index: 1, kind: input, shape index: {}]   ;;  %s2621_s2 = inlined_call_operand.hbm [shape: bf16[2,8,256], index: 2, kind: input, shape index: {}]   ;;  %s2622_s3 = inlined_call_operand.hbm [shape: f32[2,8,256], index: 3, kind: output, shape index: {}]  }
   0x1   :  { %2656 = sst [smem:[#allocation30_spill]] %s2620_s1 }
   0x2   :  { %8 = vsyncpa [#allocation3], 0 }
   0x3   :  { %10 = vsyncpa [#allocation3 + $0x1], 0 }
   0x4   :  { %11 = vsyncpa [#allocation6], 0 }
   0x5   :  { %13 = vsyncpa [#allocation6 + $0x1], 0 }
   0x6   :  { %14 = vsyncpa [#allocation4], 0 }
   0x7   :  { %16 = vsyncpa [#allocation4 + $0x1], 0  ;;  %s1821_s12 = smov 0   ;;  %s1823_s13 = smov 0  }
   0x8   :  { %s1825_s14 = smov 0   ;;  %s1827_s15 = smov 0  }
   0x9   :  { %s1829_s16 = smov 0   ;;  %s1831_s17 = smov 0  }
   0xa LB: > { %2657 = sst [smem:[#allocation12_spill]] %s1790_s16  ;;  %s1852_s18 = sadd.s32 4294967295, %s1794_s17   ;;  %s1794_s17 = sphi %s1831_s17, %s22_s17   ;;  %s1790_s16 = sphi %s1829_s16, %s2734_s16   ;;  %s1786_s15 = sphi %s1827_s15, %s2733_s15   ;;  %s1782_s14 = sphi %s1825_s14, %s2737_s14   ;;  %s1778_s13 = sphi %s1823_s13, %s2736_s13   ;;  %s1774_s12 = sphi %s1821_s12, %s2735_s12  }
   0xb   : > { %s1298_s19 = sadd.s32 4294967294, %s1794_s17   ;;  %s34_s20 = sadd.s32 1, %s1790_s16 }
   0xc   : > { %s43_s21 = sadd.s32 1, %s1782_s14  ;;  %p36_p0 = scmp.ge.s32.totalorder %s34_s20, 2 }
   0xd   : > { %p50_p1 = scmp.ne.s32.totalorder %s1782_s14, %s1778_s13  ;;  %p51_p2 = scmp.eq.s32.totalorder %s1794_s17, 0 }
   0xe   : > { %p56_p3 = scmp.ne.s32.totalorder %s1778_s13, %s1774_s12  ;;  %s2739_s20 = smov (%p36_p0, %s34_s20), 0 }
   0xf   : > { %2658 = sst [smem:[#allocation13_spill]] %s2739_s20  ;;  %p1864_p4 = por %p51_p2, %p50_p1 }
  0x10   : > { %p57_p5 = scmp.eq.s32.totalorder %s1852_s18, 0  ;;  %s38_s23 = ssub.s32 %s1790_s16, %s2739_s20 }
  0x11   : > { %p134_p6 = scmp.eq.s32.totalorder %s1852_s18, 1  ;;  %p41_p7 = scmp.eq.s32.totalorder %s38_s23, 0 }
  0x12   : > { %p1872_p8 = por %p57_p5, %p56_p3  ;;  %p140_p10 = scmp.eq.s32.totalorder %s1298_s19, 1 }
  0x13   : > { %p1876_p9 = por %p134_p6, %p50_p1  ;;  %p1369_p13 = scmp.lt.s32.totalorder %s1794_s17, 2 }
  0x14   : > { %s2660_s24 = scalar_select %p1872_p8, 1, 0 }
  0x15   : > { %s2661_s25 = scalar_select %p1876_p9, 1, 0 }
  0x16   : > { %s1881_s26 = scalar_select %p41_p7, %s1782_s14, %s43_s21  }
  0x17   : > { %p1883_p11 = por %p140_p10, %p56_p3  ;;  %s160_s28 = sand.u32 1, %s1782_s14  }
  0x18   : > { %2662 = sst [smem:[#allocation14_spill]] %s1881_s26  ;;  %s1892_s29 = sshll.u32 %s160_s28, 3 }
  0x19   : > { %s2663_s27 = scalar_select %p1883_p11, 1, 0 }
  0x1a   : > { %s1895_s30 = sshll.u32 %s1790_s16, 7  ;;  %p1899_p0 = pnand %p1369_p13, %p1864_p4 }
  0x1b   : > { %s181_s5 = sand.u32 1, %s1794_s17   ;;  %s2665_s1 = sld [smem:[#allocation30_spill]] }
  0x1c   : > { %s2664_s4 = scalar_select %p1899_p0, 1, 0 }
  0x1d   : > { %s185_s9 = scalar_lea.vmem [#allocation5], %s1892_s29  ;;  %s1915_s11 = scalar_lea.sflag [#allocation6], %s181_s5 }
  0x1e   : > { %s193_s10 = sshll.u32 %s185_s9, 4  ;;  %p1921_p4 = pneg %p1899_p0  ;;  %s1912_s10 = int_to_ptr.vmem [resolvable:$true] %s193_s10 }
  0x21   : > { %s1908_s8 = scalar_lea.hbm %s2665_s1, %s1895_s30  ;;  %s1623_s6 = scalar_lea.hbm %s2665_s1, 256 }
  0x22   : > { %s1618_s19 = scalar_lea.hbm %s1908_s8, 128  ;;  %p1624_p7 = scmp.lt.u32.totalorder %s1908_s8, %s2665_s1 }
  0x23   : > { %p1619_p3 = scmp.ne.s32.totalorder %s1908_s8, %s1618_s19  ;;  %p1625_p10 = scmp.lt.u32.totalorder %s1623_s6, %s1618_s19 }
  0x24   : > { %p1627_p12 = scmp.lt.u32.totalorder %s1618_s19, %s1908_s8 }
  0x25   : > { %p1621_p5 = pnand %p1921_p4, %p1619_p3  ;;  %p1626_p13 = por %p1625_p10, %p1624_p7 }
  0x27   : > { %p1622_p6 = pneg %p1621_p5  ;;  %p1628_p1 = por %p1627_p12, %p1626_p13 }
  0x29   : > { %p1629_p2 = pnand %p1628_p1, %p1622_p6 }
  0x2b   : > { %1632 = shalt.err (!%p1629_p2)
}
  0x2c   : > { %s1633_s5 = scalar_lea.vmem %s1912_s10, 128  ;;  %s1796_s22 = smov [#allocation5]  }
  0x2d   : > { %p1634_p3 = scmp.ne.s32.totalorder %s1912_s10, %s1633_s5  ;;  %s1638_s23 = sshll.u32 %s1796_s22, 4  ;;  %s1639_s23 = int_to_ptr.vmem [resolvable:$false] %s1638_s23 }
  0x2e   : > { %s1640_s7 = scalar_lea.vmem %s1639_s23, 256  ;;  %p1641_p9 = scmp.lt.s32.totalorder %s1912_s10, %s1639_s23 }
  0x2f   : > { %p1636_p5 = pnand %p1634_p3, %p1921_p4  ;;  %p1642_p8 = scmp.lt.s32.totalorder %s1640_s7, %s1633_s5 }
  0x31   : > { %p1637_p11 = pneg %p1636_p5  ;;  %p1643_p7 = por %p1642_p8, %p1641_p9 }
  0x33   : > { %p1644_p10 = pnand %p1643_p7, %p1637_p11 }
  0x35   : > { %1647 = shalt.err (!%p1644_p10)
}
  0x36   : > { %1361 = dma.hbm_to_vmem [thread:$0]  (!%p1899_p0), %s1908_s8, 128, %s1912_s10, %s1915_s11  }
  0x37   : > { %p2667_p12 = scmp.lt.s32.totalorder %s1794_s17, 3  ;;  %p2668_p1 = scmp.ge.s32.totalorder %s1794_s17, 1 }
  0x38   : > { %s1957_s5 = scalar_lea.hbm %s2619_s0, %s1895_s30  ;;  %s164_s22 = scalar_lea.vmem [#allocation2], %s1892_s29 }
  0x39   : > { %p1949_p2 = pnand %p2668_p1, %p2667_p12  ;;  %s174_s23 = sshll.u32 %s164_s22, 4  ;;  %s1960_s23 = int_to_ptr.vmem [resolvable:$true] %s174_s23 }
  0x3a   : > { %s1966_s7 = scalar_lea.hbm %s2621_s2, %s1895_s30  ;;  %s161_s1 = scalar_lea.sflag [#allocation3], %s160_s28 }
  0x3b   : > { %s2669_s19 = scalar_select %p1949_p2, 1, 0 }
  0x3c   : > { %s1648_s20 = scalar_lea.hbm %s1957_s5, 128  ;;  %s1653_s16 = scalar_lea.hbm %s2619_s0, 256 }
  0x3d   : > { %p1649_p8 = scmp.ne.s32.totalorder %s1957_s5, %s1648_s20  ;;  %p1654_p6 = scmp.lt.u32.totalorder %s1957_s5, %s2619_s0 }
  0x3e   : > { %p1655_p13 = scmp.lt.u32.totalorder %s1653_s16, %s1648_s20  ;;  %p1657_p5 = scmp.lt.u32.totalorder %s1648_s20, %s1957_s5 }
  0x3f   : > { %p1651_p9 = pnand %p1649_p8, %p1921_p4 }
  0x40   : > { %p1656_p3 = por %p1655_p13, %p1654_p6 }
  0x41   : > { %p1652_p11 = pneg %p1651_p9 }
  0x42   : > { %p1658_p7 = por %p1657_p5, %p1656_p3 }
  0x44   : > { %p1659_p10 = pnand %p1658_p7, %p1652_p11 }
  0x46   : > { %1662 = shalt.err (!%p1659_p10)
}
  0x47   : > { %s1663_s28 = scalar_lea.vmem %s1960_s23, 128  ;;  %s1797_s30 = smov [#allocation2]  }
  0x48   : > { %p1664_p12 = scmp.ne.s32.totalorder %s1960_s23, %s1663_s28  ;;  %s1668_s8 = sshll.u32 %s1797_s30, 4  ;;  %s1669_s8 = int_to_ptr.vmem [resolvable:$false] %s1668_s8 }
  0x49   : > { %s1670_s26 = scalar_lea.vmem %s1669_s8, 256  ;;  %p1671_p9 = scmp.lt.s32.totalorder %s1960_s23, %s1669_s8 }
  0x4a   : > { %p1666_p1 = pnand %p1664_p12, %p1921_p4  ;;  %p1672_p2 = scmp.lt.s32.totalorder %s1670_s26, %s1663_s28 }
  0x4c   : > { %p1667_p8 = pneg %p1666_p1  ;;  %p1673_p6 = por %p1672_p2, %p1671_p9 }
  0x4e   : > { %p1674_p13 = pnand %p1673_p6, %p1667_p8 }
  0x50   : > { %1677 = shalt.err (!%p1674_p13)
}
  0x51   : > { %1358 = dma.hbm_to_vmem [thread:$0]  (!%p1899_p0), %s1957_s5, 128, %s1960_s23, %s161_s1  }
  0x52   : > { %s204_s16 = scalar_lea.vmem [#allocation7], %s1892_s29  ;;  %s1678_s10 = scalar_lea.hbm %s1966_s7, 128 }
  0x53   : > { %s214_s20 = sshll.u32 %s204_s16, 4  ;;  %p1679_p11 = scmp.ne.s32.totalorder %s1966_s7, %s1678_s10  ;;  %s215_s20 = int_to_ptr.vmem [resolvable:$true] %s214_s20 }
  0x54   : > { %s1683_s22 = scalar_lea.hbm %s2621_s2, 256  ;;  %p1684_p5 = scmp.lt.u32.totalorder %s1966_s7, %s2621_s2 }
  0x55   : > { %p1681_p2 = pnand %p1679_p11, %p1921_p4  ;;  %p1685_p7 = scmp.lt.u32.totalorder %s1683_s22, %s1678_s10 }
  0x56   : > { %p1687_p12 = scmp.lt.u32.totalorder %s1678_s10, %s1966_s7 }
  0x57   : > { %p1682_p3 = pneg %p1681_p2  ;;  %p1686_p10 = por %p1685_p7, %p1684_p5 }
  0x59   : > { %p1688_p1 = por %p1687_p12, %p1686_p10 }
  0x5b   : > { %p1689_p8 = pnand %p1688_p1, %p1682_p3 }
  0x5d   : > { %1692 = shalt.err (!%p1689_p8)
}
  0x5e   : > { %s1693_s1 = scalar_lea.vmem %s215_s20, 128  ;;  %s1798_s29 = smov [#allocation7]  }
  0x5f   : > { %p1694_p9 = scmp.ne.s32.totalorder %s215_s20, %s1693_s1  ;;  %s1698_s5 = sshll.u32 %s1798_s29, 4  ;;  %s1699_s5 = int_to_ptr.vmem [resolvable:$false] %s1698_s5 }
  0x60   : > { %s1700_s23 = scalar_lea.vmem %s1699_s5, 256  ;;  %p1701_p11 = scmp.lt.s32.totalorder %s215_s20, %s1699_s5 }
  0x61   : > { %p1696_p6 = pnand %p1694_p9, %p1921_p4  ;;  %p1702_p2 = scmp.lt.s32.totalorder %s1700_s23, %s1693_s1 }
  0x63   : > { %p1697_p13 = pneg %p1696_p6  ;;  %p1703_p0 = por %p1702_p2, %p1701_p11 }
  0x65   : > { %p1704_p5 = pnand %p1703_p0, %p1697_p13 }
  0x67   : > { %1707 = shalt.err (!%p1704_p5)
}
  0x68   : > { %p2670_p7 = scmp.ne.s32.totalorder %s2664_s4, 0  ;;  %p2671_p3 = scmp.ne.s32.totalorder %s2669_s19, 0 }
  0x6a   : > { %1364 = dma.hbm_to_vmem [thread:$0]  (!%p2670_p7), %s1966_s7, 128, %s215_s20, %s1915_s11  }
  0x6b   : > { %223 = sbr.rel (%p2671_p3) target bundleno = 1113 (0x459), region = 32 }
  0x72   : > { %s2013_s21 = sand.u32 1, %s1778_s13   ;;  %p2672_p0 = scmp.ne.s32.totalorder %s2660_s24, 0 }
  0x73   : > { %s2016_s8 = sshll.u32 %s2013_s21, 3  ;;  %s226_s26 = scalar_lea.sflag [#allocation3], %s2013_s21 }
  0x74   : > { %s229_s16 = scalar_lea.vmem [#allocation2], %s2016_s8 }
  0x75   : > { %1761 = dma.done.wait (%p2672_p0), %s226_s26, 128  }
  0x76   : > { %1763 = vsyncadd (%p2672_p0), %s226_s26, 4294967168  ;;  %s234_s4 = sand.u32 1, %s1852_s18   ;;  %s238_s19 = scalar_lea.vmem [#allocation5], %s2016_s8 }
  0x77   : > { %s235_s11 = scalar_lea.sflag [#allocation6], %s234_s4 }
  0x78   : > { %1765 = dma.done.wait (%p2672_p0), %s235_s11, 256  }
  0x79   : > { %1767 = vsyncadd (%p2672_p0), %s235_s11, 4294967040  ;;  %v1799_v0 = vmov 0   ;;  %v283_v1 = vld [vmem:[%s229_s16] sm:$0xff]  ;;  %v284_v2 = vld [vmem:[%s238_s19] sm:$0xff]  ;;  %vm378_vm0 = vcmask 1043456   ;;  %vm329_vm1 = vcmask 64512  }
  0x7a   : > { %417 = vmatprep.mubr.bf16.mxu0 %v1799_v0  ;;  %v1315_v3 = vcombine.low %v283_v1, %v283_v1  ;;  %v1318_v4 = vcombine.high %v284_v2, %v284_v2  ;;  %v1317_v5 = vcombine.low %v284_v2, %v284_v2  ;;  %v1316_v7 = vcombine.high %v283_v1, %v283_v1  ;;  %s247_s18 = scalar_lea.vmem [#allocation7], %s2016_s8  ;;  %s1314_s24 = sshll.u32 %s2013_s21, 4 }
  0x7b   : > { %s279_s7 = scalar_lea.vmem [#allocation8], %s1314_s24  ;;  %s1346_s10 = sshll.u32 %s1786_s15, 8 }
  0x7c   : > { %292 = vxpose.xlu0.c.b16.start.end [1/1] (short) %v1315_v3, 128  ;;  %1319 = vmatprep.subr.msk.bf16.mxu0 %vm378_vm0, %v1318_v4  ;;  %v380_v6 = vsel %vm378_vm0, %v1317_v5, 0  ;;  %s1170_s20 = sshll.u32 %s279_s7, 4  ;;  %s2572_s22 = scalar_lea.hbm %s2622_s3, %s1346_s10  ;;  %s2567_s20 = int_to_ptr.vmem [resolvable:$true] %s1170_s20 }
  0x7d   : > { %386 = vmatpush1.bf16.msra.mxu0 %v380_v6  ;;  %s1156_s28 = scalar_lea.sflag [#allocation4], %s2013_s21  ;;  %s1708_s30 = scalar_lea.vmem %s2567_s20, 256 }
  0x7e   : > { %p1709_p4 = scmp.ne.s32.totalorder %s2567_s20, %s1708_s30  ;;  %p2729_p10 = scmp.ne.s32.totalorder %s2661_s25, 0 }
  0x7f   : > { %s1800_s15 = smov [#allocation8]  }
  0x80   : > { %p1710_p12 = pnand %p1709_p4, %p2729_p10  ;;  %s1712_s1 = sshll.u32 %s1800_s15, 4  ;;  %s1713_s1 = int_to_ptr.vmem [resolvable:$false] %s1712_s1 }
  0x81   : > { %s1714_s29 = scalar_lea.vmem %s1713_s1, 512  ;;  %p1715_p8 = scmp.lt.s32.totalorder %s2567_s20, %s1713_s1 }
  0x82   : > { %p1711_p1 = pneg %p1710_p12  ;;  %p1716_p9 = scmp.lt.s32.totalorder %s1714_s29, %s1708_s30 }
  0x84   : > { %p1717_p6 = por %p1716_p9, %p1715_p8 }
  0x86   : > { %p1718_p13 = pnand %p1717_p6, %p1711_p1 }
  0x99   : > { %308 = vxpose.xlu0.c.b16.start.end [1/1] (short) %v1316_v7, 128 }
  0xe2   : > { %v300_v8 = vpop.trf.xlu0 }
  0xe3   : > { %1320 = vmatmul.mubr.msk.bf16.vlgmr.msra.gmra.mrb[0].mxu0 %vm329_vm1, %v300_v8 }
  0xe4   : > { %427 = vmatprep.mubr.bf16.mxu0 %v1799_v0 }
  0xe6   : > { %v301_v9 = vpop.trf.xlu0 }
  0xea   : > { %v302_v10 = vpop.trf.xlu0 }
  0xeb   : > { %1321 = vmatmul.mubr.msk.bf16.gmra.mrb[4].mxu0 %vm329_vm1, %v301_v9 }
  0xec   : > { %437 = vmatprep.mubr.bf16.mxu0 %v1799_v0 }
  0xee   : > { %v303_v11 = vpop.trf.xlu0 }
  0xf2   : > { %v304_v12 = vpop.trf.xlu0 }
  0xf3   : > { %1322 = vmatmul.mubr.msk.bf16.gmra.mrb[8].mxu0 %vm329_vm1, %v302_v10 }
  0xf4   : > { %447 = vmatprep.mubr.bf16.mxu0 %v1799_v0 }
  0xf6   : > { %v305_v13 = vpop.trf.xlu0 }
  0xfa   : > { %v306_v14 = vpop.trf.xlu0 }
  0xfb   : > { %1323 = vmatmul.mubr.msk.bf16.gmra.mrb[12].mxu0 %vm329_vm1, %v303_v11 }
  0xfc   : > { %457 = vmatprep.mubr.bf16.mxu0 %v1799_v0 }
  0xfe   : > { %v307_v15 = vpop.trf.xlu0 }
 0x102   : > { %v316_v16 = vpop.trf.xlu0 }
 0x103   : > { %1324 = vmatmul.mubr.msk.bf16.gmra.mrb[16].mxu0 %vm329_vm1, %v304_v12 }
 0x104   : > { %467 = vmatprep.mubr.bf16.mxu0 %v1799_v0 }
 0x106   : > { %v317_v17 = vpop.trf.xlu0 }
 0x10a   : > { %v318_v18 = vpop.trf.xlu0 }
 0x10b   : > { %1325 = vmatmul.mubr.msk.bf16.gmra.mrb[20].mxu0 %vm329_vm1, %v305_v13 }
 0x10c   : > { %477 = vmatprep.mubr.bf16.mxu0 %v1799_v0 }
 0x10e   : > { %v319_v19 = vpop.trf.xlu0 }
 0x112   : > { %v320_v20 = vpop.trf.xlu0 }
 0x113   : > { %1326 = vmatmul.mubr.msk.bf16.gmra.mrb[24].mxu0 %vm329_vm1, %v306_v14 }
 0x114   : > { %487 = vmatprep.mubr.bf16.mxu0 %v1799_v0 }
 0x116   : > { %v321_v21 = vpop.trf.xlu0 }
 0x11a   : > { %v322_v22 = vpop.trf.xlu0 }
 0x11b   : > { %1327 = vmatmul.mubr.msk.bf16.gmra.mrb[28].mxu0 %vm329_vm1, %v307_v15 }
 0x11c   : > { %497 = vmatprep.mubr.bf16.mxu0 %v1799_v0 }
 0x11e   : > { %v323_v23 = vpop.trf.xlu0 }
 0x123   : > { %1328 = vmatmul.mubr.msk.bf16.gmra.mrb[32].mxu0 %vm329_vm1, %v316_v16 }
 0x124   : > { %507 = vmatprep.mubr.bf16.mxu0 %v1799_v0 }
 0x12b   : > { %1329 = vmatmul.mubr.msk.bf16.gmra.mrb[36].mxu0 %vm329_vm1, %v317_v17 }
 0x12c   : > { %517 = vmatprep.mubr.bf16.mxu0 %v1799_v0 }
 0x133   : > { %1330 = vmatmul.mubr.msk.bf16.gmra.mrb[40].mxu0 %vm329_vm1, %v318_v18 }
 0x134   : > { %527 = vmatprep.mubr.bf16.mxu0 %v1799_v0 }
 0x13b   : > { %1331 = vmatmul.mubr.msk.bf16.gmra.mrb[44].mxu0 %vm329_vm1, %v319_v19 }
 0x13c   : > { %537 = vmatprep.mubr.bf16.mxu0 %v1799_v0 }
 0x143   : > { %1332 = vmatmul.mubr.msk.bf16.gmra.mrb[48].mxu0 %vm329_vm1, %v320_v20 }
 0x144   : > { %547 = vmatprep.mubr.bf16.mxu0 %v1799_v0 }
 0x14b   : > { %1333 = vmatmul.mubr.msk.bf16.gmra.mrb[52].mxu0 %vm329_vm1, %v321_v21 }
 0x14c   : > { %557 = vmatprep.mubr.bf16.mxu0 %v1799_v0 }
 0x153   : > { %1334 = vmatmul.mubr.msk.bf16.gmra.mrb[56].mxu0 %vm329_vm1, %v322_v22 }
 0x154   : > { %567 = vmatprep.mubr.bf16.mxu0 %v1799_v0 }
 0x15b   : > { %1335 = vmatmul.mubr.msk.bf16.gmra.mrb[60].mxu0 %vm329_vm1, %v323_v23 }
 0x1b6   : > { %v2046_v24 = vpop.f32.mrb[0].mxu0 }
 0x1b7   : > { %v2048_v25 = vpop.f32.mrb[1].mxu0 }
 0x1b8   : > { %v2050_v26 = vpop.f32.mrb[2].mxu0  ;;  %v578_v27 = vmax.f32 %v2046_v24, %v2048_v25 }
 0x1b9   : > { %v2054_v28 = vpop.f32.mrb[3].mxu0 }
 0x1ba   : > { %579 = vmax.xlane.f32.xlu1 %v578_v27  ;;  %v581_v29 = vmax.f32 %v2050_v26, %v2054_v28 }
 0x1be   : > { %582 = vmax.xlane.f32.xlu1 %v581_v29  ;;  %v2058_v30 = vpop.f32.mrb[4].mxu0 }
 0x1bf   : > { %v2060_v31 = vpop.f32.mrb[5].mxu0 }
 0x1c0   : > { %v2062_v32 = vpop.f32.mrb[6].mxu0  ;;  %v584_v33 = vmax.f32 %v2058_v30, %v2060_v31 }
 0x1c1   : > { %v2066_v34 = vpop.f32.mrb[7].mxu0 }
 0x1c2   : > { %585 = vmax.xlane.f32.xlu1 %v584_v33  ;;  %v587_v35 = vmax.f32 %v2062_v32, %v2066_v34 }
 0x1c6   : > { %588 = vmax.xlane.f32.xlu1 %v587_v35  ;;  %v2070_v36 = vpop.f32.mrb[8].mxu0 }
 0x1c7   : > { %v2072_v37 = vpop.f32.mrb[9].mxu0 }
 0x1c8   : > { %v2074_v38 = vpop.f32.mrb[10].mxu0  ;;  %v590_v39 = vmax.f32 %v2070_v36, %v2072_v37 }
 0x1c9   : > { %v2078_v40 = vpop.f32.mrb[11].mxu0 }
 0x1ca   : > { %591 = vmax.xlane.f32.xlu1 %v590_v39  ;;  %v593_v41 = vmax.f32 %v2074_v38, %v2078_v40 }
 0x1ce   : > { %594 = vmax.xlane.f32.xlu1 %v593_v41  ;;  %v2082_v42 = vpop.f32.mrb[12].mxu0 }
 0x1cf   : > { %v2084_v43 = vpop.f32.mrb[13].mxu0 }
 0x1d0   : > { %v2086_v44 = vpop.f32.mrb[14].mxu0  ;;  %v596_v45 = vmax.f32 %v2082_v42, %v2084_v43 }
 0x1d1   : > { %v2090_v46 = vpop.f32.mrb[15].mxu0 }
 0x1d2   : > { %597 = vmax.xlane.f32.xlu1 %v596_v45  ;;  %v599_v47 = vmax.f32 %v2086_v44, %v2090_v46 }
 0x1d6   : > { %600 = vmax.xlane.f32.xlu1 %v599_v47  ;;  %v2094_v48 = vpop.f32.mrb[16].mxu0 }
 0x1d7   : > { %v2096_v49 = vpop.f32.mrb[17].mxu0 }
 0x1d8   : > { %v2098_v50 = vpop.f32.mrb[18].mxu0  ;;  %v602_v51 = vmax.f32 %v2094_v48, %v2096_v49 }
 0x1d9   : > { %v2102_v52 = vpop.f32.mrb[19].mxu0 }
 0x1da   : > { %603 = vmax.xlane.f32.xlu1 %v602_v51  ;;  %v605_v53 = vmax.f32 %v2098_v50, %v2102_v52 }
 0x1dc   : > { %606 = vmax.xlane.f32.xlu0 %v605_v53 }
 0x1de   : > { %v2106_v54 = vpop.f32.mrb[20].mxu0 }
 0x1df   : > { %v2108_v55 = vpop.f32.mrb[21].mxu0 }
 0x1e0   : > { %v2110_v56 = vpop.f32.mrb[22].mxu0  ;;  %v608_v57 = vmax.f32 %v2106_v54, %v2108_v55 }
 0x1e1   : > { %v2114_v58 = vpop.f32.mrb[23].mxu0 }
 0x1e2   : > { %609 = vmax.xlane.f32.xlu1 %v608_v57  ;;  %v611_v59 = vmax.f32 %v2110_v56, %v2114_v58 }
 0x1e6   : > { %612 = vmax.xlane.f32.xlu1 %v611_v59  ;;  %v2118_v60 = vpop.f32.mrb[24].mxu0 }
 0x1e7   : > { %v2120_v61 = vpop.f32.mrb[25].mxu0 }
 0x1e8   : > { %v2122_v62 = vpop.f32.mrb[26].mxu0  ;;  %v614_v63 = vmax.f32 %v2118_v60, %v2120_v61 }
 0x1e9   : > { %v2126_v0 = vpop.f32.mrb[27].mxu0 }
 0x1ea   : > { %615 = vmax.xlane.f32.xlu1 %v614_v63  ;;  %v617_v1 = vmax.f32 %v2122_v62, %v2126_v0 }
 0x1ee   : > { %618 = vmax.xlane.f32.xlu1 %v617_v1  ;;  %v2130_v2 = vpop.f32.mrb[28].mxu0 }
 0x1ef   : > { %v2132_v3 = vpop.f32.mrb[29].mxu0 }
 0x1f0   : > { %v2134_v4 = vpop.f32.mrb[30].mxu0  ;;  %v620_v5 = vmax.f32 %v2130_v2, %v2132_v3 }
 0x1f1   : > { %v2138_v6 = vpop.f32.mrb[31].mxu0 }
 0x1f2   : > { %621 = vmax.xlane.f32.xlu1 %v620_v5  ;;  %v623_v7 = vmax.f32 %v2134_v4, %v2138_v6 }
 0x1f6   : > { %624 = vmax.xlane.f32.xlu1 %v623_v7  ;;  %v2142_v8 = vpop.f32.mrb[32].mxu0 }
 0x1f7   : > { %v2144_v9 = vpop.f32.mrb[33].mxu0 }
 0x1f8   : > { %v2146_v10 = vpop.f32.mrb[34].mxu0  ;;  %v626_v11 = vmax.f32 %v2142_v8, %v2144_v9 }
 0x1f9   : > { %v2150_v12 = vpop.f32.mrb[35].mxu0 }
 0x1fa   : > { %627 = vmax.xlane.f32.xlu1 %v626_v11  ;;  %v629_v13 = vmax.f32 %v2146_v10, %v2150_v12 }
 0x1fe   : > { %630 = vmax.xlane.f32.xlu1 %v629_v13  ;;  %v2154_v14 = vpop.f32.mrb[36].mxu0 }
 0x1ff   : > { %v2156_v15 = vpop.f32.mrb[37].mxu0 }
 0x200   : > { %v2158_v16 = vpop.f32.mrb[38].mxu0  ;;  %v632_v17 = vmax.f32 %v2154_v14, %v2156_v15 }
 0x201   : > { %v2162_v18 = vpop.f32.mrb[39].mxu0 }
 0x202   : > { %633 = vmax.xlane.f32.xlu1 %v632_v17  ;;  %v635_v19 = vmax.f32 %v2158_v16, %v2162_v18 }
 0x206   : > { %636 = vmax.xlane.f32.xlu1 %v635_v19  ;;  %v2166_v20 = vpop.f32.mrb[40].mxu0 }
 0x207   : > { %v2168_v21 = vpop.f32.mrb[41].mxu0 }
 0x208   : > { %v2170_v22 = vpop.f32.mrb[42].mxu0  ;;  %v638_v23 = vmax.f32 %v2166_v20, %v2168_v21 }
 0x209   : > { %v2174_v27 = vpop.f32.mrb[43].mxu0 }
 0x20a   : > { %639 = vmax.xlane.f32.xlu0 %v638_v23  ;;  %v641_v29 = vmax.f32 %v2170_v22, %v2174_v27 }
 0x20c   : > { %642 = vmax.xlane.f32.xlu1 %v641_v29 }
 0x20e   : > { %v2178_v33 = vpop.f32.mrb[44].mxu0 }
 0x20f   : > { %v2180_v35 = vpop.f32.mrb[45].mxu0 }
 0x210   : > { %v2182_v39 = vpop.f32.mrb[46].mxu0  ;;  %v644_v41 = vmax.f32 %v2178_v33, %v2180_v35 }
 0x211   : > { %v2186_v45 = vpop.f32.mrb[47].mxu0 }
 0x212   : > { %645 = vmax.xlane.f32.xlu0 %v644_v41  ;;  %v647_v47 = vmax.f32 %v2182_v39, %v2186_v45 }
 0x214   : > { %648 = vmax.xlane.f32.xlu1 %v647_v47 }
 0x216   : > { %v2190_v51 = vpop.f32.mrb[48].mxu0 }
 0x217   : > { %v2192_v53 = vpop.f32.mrb[49].mxu0 }
 0x218   : > { %2673 = vst [vmem:[#allocation15_spill] sm:$0xff] %v2192_v53  ;;  %v2194_v57 = vpop.f32.mrb[50].mxu0  ;;  %v650_v59 = vmax.f32 %v2190_v51, %v2192_v53 }
 0x219   : > { %2674 = vst [vmem:[#allocation16_spill] sm:$0xff] %v2194_v57  ;;  %v2198_v63 = vpop.f32.mrb[51].mxu0 }
 0x21a   : > { %2675 = vst [vmem:[#allocation17_spill] sm:$0xff] %v2198_v63  ;;  %651 = vmax.xlane.f32.xlu0 %v650_v59  ;;  %v653_v1 = vmax.f32 %v2194_v57, %v2198_v63 }
 0x21c   : > { %654 = vmax.xlane.f32.xlu1 %v653_v1 }
 0x21e   : > { %v2202_v5 = vpop.f32.mrb[52].mxu0 }
 0x21f   : > { %2676 = vst [vmem:[#allocation18_spill] sm:$0xff] %v2202_v5  ;;  %v2204_v7 = vpop.f32.mrb[53].mxu0 }
 0x220   : > { %2677 = vst [vmem:[#allocation19_spill] sm:$0xff] %v2204_v7  ;;  %v2206_v11 = vpop.f32.mrb[54].mxu0  ;;  %v656_v13 = vmax.f32 %v2202_v5, %v2204_v7 }
 0x221   : > { %2678 = vst [vmem:[#allocation20_spill] sm:$0xff] %v2206_v11  ;;  %v2210_v17 = vpop.f32.mrb[55].mxu0 }
 0x222   : > { %2679 = vst [vmem:[#allocation21_spill] sm:$0xff] %v2210_v17  ;;  %657 = vmax.xlane.f32.xlu0 %v656_v13  ;;  %v659_v19 = vmax.f32 %v2206_v11, %v2210_v17 }
 0x224   : > { %660 = vmax.xlane.f32.xlu1 %v659_v19 }
 0x226   : > { %v2214_v23 = vpop.f32.mrb[56].mxu0 }
 0x227   : > { %2680 = vst [vmem:[#allocation22_spill] sm:$0xff] %v2214_v23  ;;  %v2216_v29 = vpop.f32.mrb[57].mxu0 }
 0x228   : > { %2681 = vst [vmem:[#allocation23_spill] sm:$0xff] %v2216_v29  ;;  %v2218_v41 = vpop.f32.mrb[58].mxu0  ;;  %v662_v47 = vmax.f32 %v2214_v23, %v2216_v29 }
 0x229   : > { %2682 = vst [vmem:[#allocation24_spill] sm:$0xff] %v2218_v41  ;;  %v2222_v59 = vpop.f32.mrb[59].mxu0 }
 0x22a   : > { %2683 = vst [vmem:[#allocation25_spill] sm:$0xff] %v2222_v59  ;;  %663 = vmax.xlane.f32.xlu0 %v662_v47  ;;  %v665_v1 = vmax.f32 %v2218_v41, %v2222_v59 }
 0x22c   : > { %666 = vmax.xlane.f32.xlu1 %v665_v1 }
 0x22e   : > { %v2226_v13 = vpop.f32.mrb[60].mxu0 }
 0x22f   : > { %2684 = vst [vmem:[#allocation26_spill] sm:$0xff] %v2226_v13  ;;  %v2228_v17 = vpop.f32.mrb[61].mxu0 }
 0x230   : > { %2685 = vst [vmem:[#allocation27_spill] sm:$0xff] %v2228_v17  ;;  %v2230_v19 = vpop.f32.mrb[62].mxu0  ;;  %v668_v11 = vmax.f32 %v2226_v13, %v2228_v17 }
 0x231   : > { %v2234_v7 = vpop.f32.mrb[63].mxu0 }
 0x232   : > { %v671_v29 = vmax.f32 %v2230_v19, %v2234_v7  ;;  %669 = vmax.xlane.f32.xlu0 %v668_v11 }
 0x234   : > { %672 = vmax.xlane.f32.xlu1 %v671_v29 }
 0x247   : > { %v580_v47 = vpop.xlane.xlu1 %579 }
 0x248   : > { %v674_v59 = vsub.f32 %v2046_v24, %v580_v47  ;;  %v675_v1 = vsub.f32 %v2048_v25, %v580_v47 }
 0x24a   : > { %v738_v41 = vmul.f32 1.442695, %v674_v59  ;;  %v740_v23 = vmul.f32 1.442695, %v675_v1 }
 0x24b   : > { %v583_v5 = vpop.xlane.xlu1 %582 }
 0x24c   : > { %1426 = vpow2.f32 %v738_v41  ;;  %v676_v63 = vsub.f32 %v2050_v26, %v583_v5  ;;  %v677_v17 = vsub.f32 %v2054_v28, %v583_v5 }
 0x24d   : > { %1428 = vpow2.f32 %v740_v23 }
 0x24e   : > { %v742_v13 = vmul.f32 1.442695, %v676_v63  ;;  %v744_v57 = vmul.f32 1.442695, %v677_v17 }
 0x24f   : > { %v586_v53 = vpop.xlane.xlu1 %585 }
 0x250   : > { %1430 = vpow2.f32 %v742_v13  ;;  %v678_v11 = vsub.f32 %v2058_v30, %v586_v53  ;;  %v679_v29 = vsub.f32 %v2060_v31, %v586_v53 }
 0x251   : > { %1432 = vpow2.f32 %v744_v57 }
 0x252   : > { %v746_v24 = vmul.f32 1.442695, %v678_v11  ;;  %v748_v25 = vmul.f32 1.442695, %v679_v29 }
 0x253   : > { %v589_v59 = vpop.xlane.xlu1 %588 }
 0x254   : > { %1434 = vpow2.f32 %v746_v24  ;;  %v680_v41 = vsub.f32 %v2062_v32, %v589_v59  ;;  %v681_v26 = vsub.f32 %v2066_v34, %v589_v59 }
 0x255   : > { %1436 = vpow2.f32 %v748_v25 }
 0x256   : > { %v2246_v28 = vpop.eup %1426  ;;  %v750_v63 = vmul.f32 1.442695, %v680_v41  ;;  %v752_v5 = vmul.f32 1.442695, %v681_v26 }
 0x257   : > { %v2248_v17 = vpop.eup %1428  ;;  %v592_v23 = vpop.xlane.xlu1 %591 }
 0x258   : > { %1438 = vpow2.f32 %v750_v63  ;;  %v682_v30 = vsub.f32 %v2070_v36, %v592_v23  ;;  %v683_v31 = vsub.f32 %v2072_v37, %v592_v23  ;;  %v866_v53 = vadd.f32 %v2248_v17, %v2246_v28 }
 0x259   : > { %1440 = vpow2.f32 %v752_v5 }
 0x25a   : > { %v2254_v32 = vpop.eup %1430  ;;  %v754_v34 = vmul.f32 1.442695, %v682_v30  ;;  %v756_v57 = vmul.f32 1.442695, %v683_v31  ;;  %867 = vadd.xlane.f32.xlu0 %v866_v53 }
 0x25b   : > { %v2256_v13 = vpop.eup %1432  ;;  %v595_v47 = vpop.xlane.xlu1 %594 }
 0x25c   : > { %1442 = vpow2.f32 %v754_v34  ;;  %v684_v1 = vsub.f32 %v2074_v38, %v595_v47  ;;  %v685_v11 = vsub.f32 %v2078_v40, %v595_v47  ;;  %v869_v36 = vadd.f32 %v2256_v13, %v2254_v32 }
 0x25d   : > { %1444 = vpow2.f32 %v756_v57 }
 0x25e   : > { %v2262_v37 = vpop.eup %1434  ;;  %v758_v29 = vmul.f32 1.442695, %v684_v1  ;;  %v760_v24 = vmul.f32 1.442695, %v685_v11  ;;  %870 = vadd.xlane.f32.xlu1 %v869_v36 }
 0x25f   : > { %v2264_v25 = vpop.eup %1436  ;;  %v598_v59 = vpop.xlane.xlu1 %597 }
 0x260   : > { %1446 = vpow2.f32 %v758_v29  ;;  %v686_v41 = vsub.f32 %v2082_v42, %v598_v59  ;;  %v687_v26 = vsub.f32 %v2084_v43, %v598_v59  ;;  %v872_v38 = vadd.f32 %v2264_v25, %v2262_v37 }
 0x261   : > { %1448 = vpow2.f32 %v760_v24 }
 0x262   : > { %v2270_v40 = vpop.eup %1438  ;;  %v762_v63 = vmul.f32 1.442695, %v686_v41  ;;  %v764_v5 = vmul.f32 1.442695, %v687_v26  ;;  %873 = vadd.xlane.f32.xlu0 %v872_v38 }
 0x263   : > { %v2272_v23 = vpop.eup %1440  ;;  %v601_v30 = vpop.xlane.xlu1 %600 }
 0x264   : > { %1450 = vpow2.f32 %v762_v63  ;;  %v688_v31 = vsub.f32 %v2086_v44, %v601_v30  ;;  %v689_v53 = vsub.f32 %v2090_v46, %v601_v30  ;;  %v875_v42 = vadd.f32 %v2272_v23, %v2270_v40 }
 0x265   : > { %1452 = vpow2.f32 %v764_v5 }
 0x266   : > { %v2278_v43 = vpop.eup %1442  ;;  %v766_v34 = vmul.f32 1.442695, %v688_v31  ;;  %v768_v57 = vmul.f32 1.442695, %v689_v53  ;;  %876 = vadd.xlane.f32.xlu1 %v875_v42 }
 0x267   : > { %v2280_v47 = vpop.eup %1444  ;;  %v604_v1 = vpop.xlane.xlu1 %603 }
 0x268   : > { %1454 = vpow2.f32 %v766_v34  ;;  %v690_v11 = vsub.f32 %v2094_v48, %v604_v1  ;;  %v691_v36 = vsub.f32 %v2096_v49, %v604_v1  ;;  %v878_v44 = vadd.f32 %v2280_v47, %v2278_v43 }
 0x269   : > { %1456 = vpow2.f32 %v768_v57  ;;  %v607_v46 = vpop.xlane.xlu0 %606 }
 0x26a   : > { %v2286_v29 = vpop.eup %1446  ;;  %v770_v24 = vmul.f32 1.442695, %v690_v11  ;;  %v772_v59 = vmul.f32 1.442695, %v691_v36  ;;  %879 = vadd.xlane.f32.xlu0 %v878_v44  ;;  %v692_v41 = vsub.f32 %v2098_v50, %v607_v46  ;;  %v693_v26 = vsub.f32 %v2102_v52, %v607_v46 }
 0x26b   : > { %v2290_v38 = vpop.eup %1448 }
 0x26c   : > { %1458 = vpow2.f32 %v770_v24  ;;  %v774_v48 = vmul.f32 1.442695, %v692_v41  ;;  %v776_v63 = vmul.f32 1.442695, %v693_v26  ;;  %v881_v49 = vadd.f32 %v2290_v38, %v2286_v29 }
 0x26d   : > { %1460 = vpow2.f32 %v772_v59 }
 0x26e   : > { %v2294_v5 = vpop.eup %1450  ;;  %1462 = vpow2.f32 %v774_v48  ;;  %882 = vadd.xlane.f32.xlu1 %v881_v49 }
 0x26f   : > { %v2296_v30 = vpop.eup %1452  ;;  %1464 = vpow2.f32 %v776_v63  ;;  %v610_v31 = vpop.xlane.xlu1 %609 }
 0x270   : > { %v694_v50 = vsub.f32 %v2106_v54, %v610_v31  ;;  %v695_v52 = vsub.f32 %v2108_v55, %v610_v31  ;;  %v884_v53 = vadd.f32 %v2296_v30, %v2294_v5 }
 0x272   : > { %v2302_v42 = vpop.eup %1454  ;;  %v778_v34 = vmul.f32 1.442695, %v694_v50  ;;  %v780_v57 = vmul.f32 1.442695, %v695_v52  ;;  %885 = vadd.xlane.f32.xlu0 %v884_v53 }
 0x273   : > { %v2304_v1 = vpop.eup %1456  ;;  %v613_v11 = vpop.xlane.xlu1 %612 }
 0x274   : > { %1466 = vpow2.f32 %v778_v34  ;;  %v696_v36 = vsub.f32 %v2110_v56, %v613_v11  ;;  %v697_v44 = vsub.f32 %v2114_v58, %v613_v11  ;;  %v887_v54 = vadd.f32 %v2304_v1, %v2302_v42 }
 0x275   : > { %1468 = vpow2.f32 %v780_v57 }
 0x276   : > { %v2310_v55 = vpop.eup %1458  ;;  %v782_v46 = vmul.f32 1.442695, %v696_v36  ;;  %v784_v24 = vmul.f32 1.442695, %v697_v44  ;;  %888 = vadd.xlane.f32.xlu1 %v887_v54 }
 0x277   : > { %v2312_v59 = vpop.eup %1460  ;;  %v616_v41 = vpop.xlane.xlu1 %615 }
 0x278   : > { %v2314_v26 = vpop.eup %1462  ;;  %1470 = vpow2.f32 %v782_v46  ;;  %v698_v48 = vsub.f32 %v2118_v60, %v616_v41  ;;  %v699_v56 = vsub.f32 %v2120_v61, %v616_v41  ;;  %v890_v58 = vadd.f32 %v2312_v59, %v2310_v55 }
 0x279   : > { %v2320_v63 = vpop.eup %1464  ;;  %1472 = vpow2.f32 %v784_v24 }
 0x27a   : > { %v786_v49 = vmul.f32 1.442695, %v698_v48  ;;  %v788_v31 = vmul.f32 1.442695, %v699_v56  ;;  %891 = vadd.xlane.f32.xlu0 %v890_v58  ;;  %v893_v50 = vadd.f32 %v2320_v63, %v2314_v26 }
 0x27b   : > { %v619_v52 = vpop.xlane.xlu1 %618 }
 0x27c   : > { %1474 = vpow2.f32 %v786_v49  ;;  %v700_v53 = vsub.f32 %v2122_v62, %v619_v52  ;;  %v701_v60 = vsub.f32 %v2126_v0, %v619_v52  ;;  %894 = vadd.xlane.f32.xlu1 %v893_v50 }
 0x27d   : > { %1476 = vpow2.f32 %v788_v31 }
 0x27e   : > { %v2326_v61 = vpop.eup %1466  ;;  %v790_v34 = vmul.f32 1.442695, %v700_v53  ;;  %v792_v57 = vmul.f32 1.442695, %v701_v60 }
 0x27f   : > { %v2328_v11 = vpop.eup %1468  ;;  %v622_v36 = vpop.xlane.xlu1 %621 }
 0x280   : > { %1478 = vpow2.f32 %v790_v34  ;;  %v702_v44 = vsub.f32 %v2130_v2, %v622_v36  ;;  %v703_v54 = vsub.f32 %v2132_v3, %v622_v36  ;;  %v896_v46 = vadd.f32 %v2328_v11, %v2326_v61 }
 0x281   : > { %1480 = vpow2.f32 %v792_v57 }
 0x282   : > { %v2334_v62 = vpop.eup %1470  ;;  %v794_v0 = vmul.f32 1.442695, %v702_v44  ;;  %v796_v24 = vmul.f32 1.442695, %v703_v54  ;;  %897 = vadd.xlane.f32.xlu0 %v896_v46 }
 0x283   : > { %v2336_v41 = vpop.eup %1472  ;;  %v625_v48 = vpop.xlane.xlu1 %624 }
 0x284   : > { %1482 = vpow2.f32 %v794_v0  ;;  %v704_v56 = vsub.f32 %v2134_v4, %v625_v48  ;;  %v705_v58 = vsub.f32 %v2138_v6, %v625_v48  ;;  %v899_v2 = vadd.f32 %v2336_v41, %v2334_v62 }
 0x285   : > { %1484 = vpow2.f32 %v796_v24 }
 0x286   : > { %v2342_v3 = vpop.eup %1474  ;;  %v798_v49 = vmul.f32 1.442695, %v704_v56  ;;  %v800_v31 = vmul.f32 1.442695, %v705_v58  ;;  %900 = vadd.xlane.f32.xlu1 %v899_v2 }
 0x287   : > { %v2344_v50 = vpop.eup %1476  ;;  %v628_v52 = vpop.xlane.xlu1 %627 }
 0x288   : > { %1486 = vpow2.f32 %v798_v49  ;;  %v706_v53 = vsub.f32 %v2142_v8, %v628_v52  ;;  %v707_v60 = vsub.f32 %v2144_v9, %v628_v52  ;;  %v902_v4 = vadd.f32 %v2344_v50, %v2342_v3 }
 0x289   : > { %1488 = vpow2.f32 %v800_v31 }
 0x28a   : > { %v2350_v6 = vpop.eup %1478  ;;  %v802_v34 = vmul.f32 1.442695, %v706_v53  ;;  %v804_v57 = vmul.f32 1.442695, %v707_v60  ;;  %903 = vadd.xlane.f32.xlu0 %v902_v4 }
 0x28b   : > { %v2352_v36 = vpop.eup %1480  ;;  %v631_v44 = vpop.xlane.xlu1 %630 }
 0x28c   : > { %1490 = vpow2.f32 %v802_v34  ;;  %v708_v54 = vsub.f32 %v2146_v10, %v631_v44  ;;  %v709_v46 = vsub.f32 %v2150_v12, %v631_v44  ;;  %v905_v8 = vadd.f32 %v2352_v36, %v2350_v6 }
 0x28d   : > { %1492 = vpow2.f32 %v804_v57 }
 0x28e   : > { %v2358_v9 = vpop.eup %1482  ;;  %v806_v0 = vmul.f32 1.442695, %v708_v54  ;;  %v808_v24 = vmul.f32 1.442695, %v709_v46  ;;  %906 = vadd.xlane.f32.xlu1 %v905_v8 }
 0x28f   : > { %v2360_v48 = vpop.eup %1484  ;;  %v634_v56 = vpop.xlane.xlu1 %633 }
 0x290   : > { %1494 = vpow2.f32 %v806_v0  ;;  %v710_v58 = vsub.f32 %v2154_v14, %v634_v56  ;;  %v711_v2 = vsub.f32 %v2156_v15, %v634_v56  ;;  %v908_v10 = vadd.f32 %v2360_v48, %v2358_v9 }
 0x291   : > { %1496 = vpow2.f32 %v808_v24 }
 0x292   : > { %v2366_v12 = vpop.eup %1486  ;;  %v810_v49 = vmul.f32 1.442695, %v710_v58  ;;  %v812_v31 = vmul.f32 1.442695, %v711_v2  ;;  %909 = vadd.xlane.f32.xlu0 %v908_v10 }
 0x293   : > { %v2368_v52 = vpop.eup %1488  ;;  %v637_v53 = vpop.xlane.xlu1 %636 }
 0x294   : > { %1498 = vpow2.f32 %v810_v49  ;;  %v712_v60 = vsub.f32 %v2158_v16, %v637_v53  ;;  %v713_v4 = vsub.f32 %v2162_v18, %v637_v53  ;;  %v911_v14 = vadd.f32 %v2368_v52, %v2366_v12 }
 0x295   : > { %1500 = vpow2.f32 %v812_v31 }
 0x296   : > { %v2374_v15 = vpop.eup %1490  ;;  %v814_v34 = vmul.f32 1.442695, %v712_v60  ;;  %v816_v57 = vmul.f32 1.442695, %v713_v4  ;;  %912 = vadd.xlane.f32.xlu1 %v911_v14 }
 0x297   : > { %v2376_v44 = vpop.eup %1492  ;;  %v640_v54 = vpop.xlane.xlu0 %639 }
 0x298   : > { %1502 = vpow2.f32 %v814_v34  ;;  %v714_v46 = vsub.f32 %v2166_v20, %v640_v54  ;;  %v715_v8 = vsub.f32 %v2168_v21, %v640_v54  ;;  %v914_v16 = vadd.f32 %v2376_v44, %v2374_v15 }
 0x299   : > { %1504 = vpow2.f32 %v816_v57  ;;  %v643_v18 = vpop.xlane.xlu1 %642 }
 0x29a   : > { %v2382_v0 = vpop.eup %1494  ;;  %v818_v24 = vmul.f32 1.442695, %v714_v46  ;;  %v820_v56 = vmul.f32 1.442695, %v715_v8  ;;  %v716_v58 = vsub.f32 %v2170_v22, %v643_v18  ;;  %v717_v2 = vsub.f32 %v2174_v27, %v643_v18  ;;  %915 = vadd.xlane.f32.xlu0 %v914_v16 }
 0x29b   : > { %v2386_v10 = vpop.eup %1496 }
 0x29c   : > { %1506 = vpow2.f32 %v818_v24  ;;  %v822_v20 = vmul.f32 1.442695, %v716_v58  ;;  %v824_v49 = vmul.f32 1.442695, %v717_v2  ;;  %v917_v21 = vadd.f32 %v2386_v10, %v2382_v0  ;;  %v2687_v2 = vld [vmem:[#allocation15_spill] sm:$0xff] }
 0x29d   : > { %1508 = vpow2.f32 %v820_v56 }
 0x29e   : > { %v2390_v31 = vpop.eup %1498  ;;  %1510 = vpow2.f32 %v822_v20  ;;  %918 = vadd.xlane.f32.xlu1 %v917_v21 }
 0x29f   : > { %v2392_v53 = vpop.eup %1500  ;;  %1512 = vpow2.f32 %v824_v49  ;;  %v646_v22 = vpop.xlane.xlu0 %645 }
 0x2a0   : > { %v718_v27 = vsub.f32 %v2178_v33, %v646_v22  ;;  %v719_v60 = vsub.f32 %v2180_v35, %v646_v22  ;;  %v920_v4 = vadd.f32 %v2392_v53, %v2390_v31 }
 0x2a1   : > { %v649_v14 = vpop.xlane.xlu1 %648 }
 0x2a2   : > { %v2398_v34 = vpop.eup %1502  ;;  %v826_v57 = vmul.f32 1.442695, %v718_v27  ;;  %v828_v54 = vmul.f32 1.442695, %v719_v60  ;;  %v720_v46 = vsub.f32 %v2182_v39, %v649_v14  ;;  %v721_v8 = vsub.f32 %v2186_v45, %v649_v14  ;;  %921 = vadd.xlane.f32.xlu0 %v920_v4  ;;  %v2688_v4 = vld [vmem:[#allocation16_spill] sm:$0xff] }
 0x2a3   : > { %v2402_v16 = vpop.eup %1504 }
 0x2a4   : > { %1514 = vpow2.f32 %v826_v57  ;;  %v830_v18 = vmul.f32 1.442695, %v720_v46  ;;  %v832_v33 = vmul.f32 1.442695, %v721_v8  ;;  %v923_v35 = vadd.f32 %v2402_v16, %v2398_v34  ;;  %v2689_v57 = vld [vmem:[#allocation17_spill] sm:$0xff] }
 0x2a5   : > { %1516 = vpow2.f32 %v828_v54 }
 0x2a6   : > { %v2406_v24 = vpop.eup %1506  ;;  %1518 = vpow2.f32 %v830_v18  ;;  %924 = vadd.xlane.f32.xlu1 %v923_v35 }
 0x2a7   : > { %v2408_v56 = vpop.eup %1508  ;;  %1520 = vpow2.f32 %v832_v33  ;;  %v652_v39 = vpop.xlane.xlu0 %651 }
 0x2a8   : > { %v2410_v58 = vpop.eup %1510  ;;  %v722_v45 = vsub.f32 %v2190_v51, %v652_v39  ;;  %v723_v20 = vsub.f32 %v2687_v2, %v652_v39  ;;  %v926_v49 = vadd.f32 %v2408_v56, %v2406_v24 }
 0x2a9   : > { %2686 = vst [vmem:[#allocation28_spill] sm:$0xff] %v2410_v58  ;;  %v2416_v21 = vpop.eup %1512  ;;  %v655_v22 = vpop.xlane.xlu1 %654 }
 0x2aa   : > { %v834_v27 = vmul.f32 1.442695, %v722_v45  ;;  %v836_v60 = vmul.f32 1.442695, %v723_v20  ;;  %v724_v14 = vsub.f32 %v2688_v4, %v655_v22  ;;  %v725_v54 = vsub.f32 %v2689_v57, %v655_v22  ;;  %927 = vadd.xlane.f32.xlu0 %v926_v49  ;;  %v2693_v45 = vld [vmem:[#allocation18_spill] sm:$0xff]  ;;  %v2694_v20 = vld [vmem:[#allocation19_spill] sm:$0xff] }
 0x2ab   : > { %v929_v46 = vadd.f32 %v2416_v21, %v2410_v58  ;;  %v2696_v57 = vld [vmem:[#allocation20_spill] sm:$0xff] }
 0x2ac   : > { %1522 = vpow2.f32 %v834_v27  ;;  %v838_v51 = vmul.f32 1.442695, %v724_v14  ;;  %v840_v8 = vmul.f32 1.442695, %v725_v54 }
 0x2ad   : > { %1524 = vpow2.f32 %v836_v60  ;;  %930 = vadd.xlane.f32.xlu1 %v929_v46  ;;  %v2697_v46 = vld [vmem:[#allocation21_spill] sm:$0xff] }
 0x2ae   : > { %v2422_v18 = vpop.eup %1514  ;;  %1526 = vpow2.f32 %v838_v51 }
 0x2af   : > { %2690 = vst [vmem:[#allocation15_spill] sm:$0xff] %v2422_v18  ;;  %v2424_v33 = vpop.eup %1516  ;;  %1528 = vpow2.f32 %v840_v8  ;;  %v658_v35 = vpop.xlane.xlu0 %657 }
 0x2b0   : > { %2691 = vst [vmem:[#allocation16_spill] sm:$0xff] %v2424_v33  ;;  %v2426_v39 = vpop.eup %1518  ;;  %v726_v2 = vsub.f32 %v2693_v45, %v658_v35  ;;  %v727_v49 = vsub.f32 %v2694_v20, %v658_v35  ;;  %v932_v22 = vadd.f32 %v2424_v33, %v2422_v18  ;;  %v2703_v18 = vld [vmem:[#allocation25_spill] sm:$0xff] }
 0x2b1   : > { %2692 = vst [vmem:[#allocation17_spill] sm:$0xff] %v2426_v39  ;;  %v2432_v27 = vpop.eup %1520  ;;  %v661_v60 = vpop.xlane.xlu1 %660 }
 0x2b2   : > { %2695 = vst [vmem:[#allocation18_spill] sm:$0xff] %v2432_v27  ;;  %v842_v4 = vmul.f32 1.442695, %v726_v2  ;;  %v844_v14 = vmul.f32 1.442695, %v727_v49  ;;  %v728_v54 = vsub.f32 %v2696_v57, %v661_v60  ;;  %v729_v51 = vsub.f32 %v2697_v46, %v661_v60  ;;  %933 = vadd.xlane.f32.xlu0 %v932_v22  ;;  %v2700_v57 = vld [vmem:[#allocation22_spill] sm:$0xff] }
 0x2b3   : > { %v935_v8 = vadd.f32 %v2432_v27, %v2426_v39  ;;  %v2701_v22 = vld [vmem:[#allocation23_spill] sm:$0xff]  ;;  %v2702_v39 = vld [vmem:[#allocation24_spill] sm:$0xff] }
 0x2b4   : > { %1530 = vpow2.f32 %v842_v4  ;;  %v846_v45 = vmul.f32 1.442695, %v728_v54  ;;  %v848_v58 = vmul.f32 1.442695, %v729_v51 }
 0x2b5   : > { %1532 = vpow2.f32 %v844_v14  ;;  %936 = vadd.xlane.f32.xlu1 %v935_v8 }
 0x2b6   : > { %v2438_v35 = vpop.eup %1522  ;;  %1534 = vpow2.f32 %v846_v45 }
 0x2b7   : > { %2698 = vst [vmem:[#allocation19_spill] sm:$0xff] %v2438_v35  ;;  %v2440_v20 = vpop.eup %1524  ;;  %1536 = vpow2.f32 %v848_v58  ;;  %v664_v2 = vpop.xlane.xlu0 %663 }
 0x2b8   : > { %v2442_v49 = vpop.eup %1526  ;;  %v730_v60 = vsub.f32 %v2700_v57, %v664_v2  ;;  %v731_v46 = vsub.f32 %v2701_v22, %v664_v2  ;;  %v938_v4 = vadd.f32 %v2440_v20, %v2438_v35 }
 0x2b9   : > { %2699 = vst [vmem:[#allocation20_spill] sm:$0xff] %v2442_v49  ;;  %v2448_v54 = vpop.eup %1528  ;;  %v667_v14 = vpop.xlane.xlu1 %666 }
 0x2ba   : > { %v850_v51 = vmul.f32 1.442695, %v730_v60  ;;  %v852_v8 = vmul.f32 1.442695, %v731_v46  ;;  %v732_v45 = vsub.f32 %v2702_v39, %v667_v14  ;;  %v733_v27 = vsub.f32 %v2703_v18, %v667_v14  ;;  %939 = vadd.xlane.f32.xlu0 %v938_v4  ;;  %v2704_v39 = vld [vmem:[#allocation26_spill] sm:$0xff]  ;;  %v2705_v4 = vld [vmem:[#allocation27_spill] sm:$0xff] }
 0x2bb   : > { %v941_v58 = vadd.f32 %v2448_v54, %v2442_v49 }
 0x2bc   : > { %1538 = vpow2.f32 %v850_v51  ;;  %v854_v57 = vmul.f32 1.442695, %v732_v45  ;;  %v856_v33 = vmul.f32 1.442695, %v733_v27 }
 0x2bd   : > { %1540 = vpow2.f32 %v852_v8  ;;  %942 = vadd.xlane.f32.xlu1 %v941_v58 }
 0x2be   : > { %v2454_v2 = vpop.eup %1530  ;;  %1542 = vpow2.f32 %v854_v57 }
 0x2bf   : > { %v2456_v22 = vpop.eup %1532  ;;  %1544 = vpow2.f32 %v856_v33  ;;  %v670_v60 = vpop.xlane.xlu0 %669 }
 0x2c0   : > { %v2458_v46 = vpop.eup %1534  ;;  %v734_v18 = vsub.f32 %v2704_v39, %v670_v60  ;;  %v735_v14 = vsub.f32 %v2705_v4, %v670_v60  ;;  %v944_v51 = vadd.f32 %v2456_v22, %v2454_v2 }
 0x2c1   : > { %v2464_v45 = vpop.eup %1536  ;;  %v673_v27 = vpop.xlane.xlu1 %672 }
 0x2c2   : > { %v858_v8 = vmul.f32 1.442695, %v734_v18  ;;  %v860_v58 = vmul.f32 1.442695, %v735_v14  ;;  %v736_v57 = vsub.f32 %v2230_v19, %v673_v27  ;;  %v737_v49 = vsub.f32 %v2234_v7, %v673_v27  ;;  %945 = vadd.xlane.f32.xlu0 %v944_v51 }
 0x2c3   : > { %v947_v33 = vadd.f32 %v2464_v45, %v2458_v46 }
 0x2c4   : > { %1546 = vpow2.f32 %v858_v8  ;;  %v862_v39 = vmul.f32 1.442695, %v736_v57  ;;  %v864_v35 = vmul.f32 1.442695, %v737_v49 }
 0x2c5   : > { %1548 = vpow2.f32 %v860_v58  ;;  %948 = vadd.xlane.f32.xlu1 %v947_v33 }
 0x2c6   : > { %v2470_v60 = vpop.eup %1538  ;;  %1550 = vpow2.f32 %v862_v39 }
 0x2c7   : > { %2706 = vst [vmem:[#allocation21_spill] sm:$0xff] %v2470_v60  ;;  %v2472_v4 = vpop.eup %1540  ;;  %1552 = vpow2.f32 %v864_v35 }
 0x2c8   : > { %v2474_v18 = vpop.eup %1542  ;;  %v950_v7 = vadd.f32 %v2472_v4, %v2470_v60 }
 0x2c9   : > { %2707 = vst [vmem:[#allocation22_spill] sm:$0xff] %v2474_v18  ;;  %v2478_v19 = vpop.eup %1544 }
 0x2ca   : > { %2708 = vst [vmem:[#allocation23_spill] sm:$0xff] %v2478_v19  ;;  %951 = vadd.xlane.f32.xlu0 %v950_v7  ;;  %v953_v14 = vadd.f32 %v2478_v19, %v2474_v18  ;;  %v2495_v7 = vld [vmem:[%s247_s18] sm:$0xff] }
 0x2cb   : > { %2713 = vst [vmem:[#allocation29_spill] sm:$0xff] %v2495_v7 }
 0x2cc   : > { %954 = vadd.xlane.f32.xlu1 %v953_v14 }
 0x2ce   : > { %v2482_v49 = vpop.eup %1546 }
 0x2cf   : > { %2709 = vst [vmem:[#allocation24_spill] sm:$0xff] %v2482_v49  ;;  %v2484_v51 = vpop.eup %1548 }
 0x2d0   : > { %2710 = vst [vmem:[#allocation25_spill] sm:$0xff] %v2484_v51  ;;  %v2486_v27 = vpop.eup %1550  ;;  %v956_v35 = vadd.f32 %v2484_v51, %v2482_v49  ;;  %v1337_v49 = vcombine.high %v2495_v7, %v2495_v7 }
 0x2d1   : > { %2711 = vst [vmem:[#allocation26_spill] sm:$0xff] %v2486_v27  ;;  %v2490_v8 = vpop.eup %1552 }
 0x2d2   : > { %2712 = vst [vmem:[#allocation27_spill] sm:$0xff] %v2490_v8  ;;  %957 = vadd.xlane.f32.xlu0 %v956_v35  ;;  %v959_v58 = vadd.f32 %v2490_v8, %v2486_v27  ;;  %1130 = vmatprep.mubr.bf16.mxu1 %v1337_v49 }
 0x2d4   : > { %960 = vadd.xlane.f32.xlu1 %v959_v58 }
 0x2e7   : > { %v868_v57 = vpop.xlane.xlu0 %867 }
 0x2e8   : > { %1554 = vrcp.f32 %v868_v57 }
 0x2eb   : > { %v871_v33 = vpop.xlane.xlu1 %870 }
 0x2ec   : > { %1556 = vrcp.f32 %v871_v33 }
 0x2ef   : > { %v874_v39 = vpop.xlane.xlu0 %873 }
 0x2f0   : > { %1558 = vrcp.f32 %v874_v39 }
 0x2f2   : > { %v1555_v51 = vpop.eup %1554 }
 0x2f3   : > { %v877_v14 = vpop.xlane.xlu1 %876  ;;  %v995_v58 = vmul.f32 %v1555_v51, %v2248_v17  ;;  %v994_v33 = vmul.f32 %v1555_v51, %v2246_v28 }
 0x2f4   : > { %1560 = vrcp.f32 %v877_v14 }
 0x2f6   : > { %v1557_v35 = vpop.eup %1556 }
 0x2f7   : > { %v880_v18 = vpop.xlane.xlu0 %879  ;;  %v997_v57 = vmul.f32 %v1557_v35, %v2256_v13  ;;  %v996_v39 = vmul.f32 %v1557_v35, %v2254_v32 }
 0x2f8   : > { %1562 = vrcp.f32 %v880_v18 }
 0x2f9   : > { %v1059_v27 = vpack.c.bf16 %v997_v57, %v995_v58  ;;  %v1058_v8 = vpack.c.bf16 %v996_v39, %v994_v33 }
 0x2fa   : > { %v1559_v19 = vpop.eup %1558 }
 0x2fb   : > { %v883_v60 = vpop.xlane.xlu1 %882  ;;  %1098 = vmatprep.subr.bf16.mxu1 %v1059_v27  ;;  %v999_v7 = vmul.f32 %v1559_v19, %v2264_v25  ;;  %v998_v13 = vmul.f32 %v1559_v19, %v2262_v37 }
 0x2fc   : > { %1564 = vrcp.f32 %v883_v60  ;;  %1099 = vmatpush1.bf16.msra.mxu1 %v1058_v8 }
 0x2fe   : > { %v1561_v14 = vpop.eup %1560 }
 0x2ff   : > { %v886_v49 = vpop.xlane.xlu0 %885  ;;  %v1001_v17 = vmul.f32 %v1561_v14, %v2272_v23  ;;  %v1000_v28 = vmul.f32 %v1561_v14, %v2270_v40 }
 0x300   : > { %1566 = vrcp.f32 %v886_v49 }
 0x301   : > { %v1061_v51 = vpack.c.bf16 %v1001_v17, %v999_v7  ;;  %v1060_v32 = vpack.c.bf16 %v1000_v28, %v998_v13 }
 0x302   : > { %v1563_v18 = vpop.eup %1562 }
 0x303   : > { %v889_v35 = vpop.xlane.xlu1 %888  ;;  %1100 = vmatprep.subr.bf16.mxu1 %v1061_v51  ;;  %v1003_v8 = vmul.f32 %v1563_v18, %v2280_v47  ;;  %v1002_v23 = vmul.f32 %v1563_v18, %v2278_v43 }
 0x304   : > { %1568 = vrcp.f32 %v889_v35  ;;  %1101 = vmatpush1.bf16.msra.mxu1 %v1060_v32 }
 0x306   : > { %v1565_v60 = vpop.eup %1564 }
 0x307   : > { %v892_v27 = vpop.xlane.xlu0 %891  ;;  %v1005_v25 = vmul.f32 %v1565_v60, %v2290_v38  ;;  %v1004_v37 = vmul.f32 %v1565_v60, %v2286_v29 }
 0x308   : > { %1570 = vrcp.f32 %v892_v27 }
 0x309   : > { %v895_v40 = vpop.xlane.xlu1 %894  ;;  %v1063_v19 = vpack.c.bf16 %v1005_v25, %v1003_v8  ;;  %v1062_v7 = vpack.c.bf16 %v1004_v37, %v1002_v23 }
 0x30a   : > { %1572 = vrcp.f32 %v895_v40  ;;  %v1567_v58 = vpop.eup %1566 }
 0x30b   : > { %1102 = vmatprep.subr.bf16.mxu1 %v1063_v19  ;;  %v1007_v39 = vmul.f32 %v1567_v58, %v2296_v30  ;;  %v1006_v38 = vmul.f32 %v1567_v58, %v2294_v5 }
 0x30c   : > { %1103 = vmatpush1.bf16.msra.mxu1 %v1062_v7 }
 0x30e   : > { %v1569_v57 = vpop.eup %1568 }
 0x30f   : > { %v898_v33 = vpop.xlane.xlu0 %897  ;;  %v1009_v47 = vmul.f32 %v1569_v57, %v2304_v1  ;;  %v1008_v43 = vmul.f32 %v1569_v57, %v2302_v42 }
 0x310   : > { %1574 = vrcp.f32 %v898_v33 }
 0x311   : > { %v1065_v14 = vpack.c.bf16 %v1009_v47, %v1007_v39  ;;  %v1064_v29 = vpack.c.bf16 %v1008_v43, %v1006_v38 }
 0x312   : > { %v1571_v49 = vpop.eup %1570 }
 0x313   : > { %v901_v17 = vpop.xlane.xlu1 %900  ;;  %1104 = vmatprep.subr.bf16.mxu1 %v1065_v14  ;;  %v1011_v28 = vmul.f32 %v1571_v49, %v2312_v59  ;;  %v1010_v30 = vmul.f32 %v1571_v49, %v2310_v55 }
 0x314   : > { %v1573_v13 = vpop.eup %1572  ;;  %1576 = vrcp.f32 %v901_v17  ;;  %1105 = vmatpush1.bf16.msra.mxu1 %v1064_v29 }
 0x315   : > { %v1013_v51 = vmul.f32 %v1573_v13, %v2320_v63  ;;  %v1012_v1 = vmul.f32 %v1573_v13, %v2314_v26 }
 0x317   : > { %v904_v5 = vpop.xlane.xlu0 %903  ;;  %v1067_v32 = vpack.c.bf16 %v1013_v51, %v1011_v28  ;;  %v1066_v42 = vpack.c.bf16 %v1012_v1, %v1010_v30 }
 0x318   : > { %1578 = vrcp.f32 %v904_v5 }
 0x319   : > { %1106 = vmatprep.subr.bf16.mxu1 %v1067_v32 }
 0x31a   : > { %1107 = vmatpush1.bf16.msra.mxu1 %v1066_v42  ;;  %v1575_v18 = vpop.eup %1574 }
 0x31b   : > { %v907_v35 = vpop.xlane.xlu1 %906  ;;  %v1015_v8 = vmul.f32 %v1575_v18, %v2328_v11  ;;  %v1014_v63 = vmul.f32 %v1575_v18, %v2326_v61 }
 0x31c   : > { %1580 = vrcp.f32 %v907_v35 }
 0x31e   : > { %v1577_v60 = vpop.eup %1576 }
 0x31f   : > { %v910_v27 = vpop.xlane.xlu0 %909  ;;  %v1017_v59 = vmul.f32 %v1577_v60, %v2336_v41  ;;  %v1016_v55 = vmul.f32 %v1577_v60, %v2334_v62 }
 0x320   : > { %1582 = vrcp.f32 %v910_v27 }
 0x321   : > { %v1069_v26 = vpack.c.bf16 %v1017_v59, %v1015_v8  ;;  %v1068_v25 = vpack.c.bf16 %v1016_v55, %v1014_v63 }
 0x322   : > { %v1579_v37 = vpop.eup %1578 }
 0x323   : > { %v913_v23 = vpop.xlane.xlu1 %912  ;;  %1108 = vmatprep.subr.bf16.mxu1 %v1069_v26  ;;  %v1019_v7 = vmul.f32 %v1579_v37, %v2344_v50  ;;  %v1018_v41 = vmul.f32 %v1579_v37, %v2342_v3 }
 0x324   : > { %1584 = vrcp.f32 %v913_v23  ;;  %1109 = vmatpush1.bf16.msra.mxu1 %v1068_v25  ;;  %v2715_v23 = vld [vmem:[#allocation16_spill] sm:$0xff] }
 0x326   : > { %v1581_v40 = vpop.eup %1580 }
 0x327   : > { %v916_v19 = vpop.xlane.xlu0 %915  ;;  %v1021_v11 = vmul.f32 %v1581_v40, %v2352_v36  ;;  %v1020_v61 = vmul.f32 %v1581_v40, %v2350_v6  ;;  %v2716_v40 = vld [vmem:[#allocation18_spill] sm:$0xff] }
 0x328   : > { %1586 = vrcp.f32 %v916_v19  ;;  %v2717_v19 = vld [vmem:[#allocation15_spill] sm:$0xff] }
 0x329   : > { %v1071_v58 = vpack.c.bf16 %v1021_v11, %v1019_v7  ;;  %v1070_v62 = vpack.c.bf16 %v1020_v61, %v1018_v41  ;;  %v2718_v7 = vld [vmem:[#allocation17_spill] sm:$0xff] }
 0x32a   : > { %v1583_v33 = vpop.eup %1582 }
 0x32b   : > { %v919_v57 = vpop.xlane.xlu1 %918  ;;  %1110 = vmatprep.subr.bf16.mxu1 %v1071_v58  ;;  %v1023_v38 = vmul.f32 %v1583_v33, %v2360_v48  ;;  %v1022_v36 = vmul.f32 %v1583_v33, %v2358_v9 }
 0x32c   : > { %1588 = vrcp.f32 %v919_v57  ;;  %1111 = vmatpush1.bf16.msra.mxu1 %v1070_v62 }
 0x32e   : > { %v1585_v39 = vpop.eup %1584 }
 0x32f   : > { %v922_v47 = vpop.xlane.xlu0 %921  ;;  %v1025_v50 = vmul.f32 %v1585_v39, %v2368_v52  ;;  %v1024_v3 = vmul.f32 %v1585_v39, %v2366_v12 }
 0x330   : > { %1590 = vrcp.f32 %v922_v47  ;;  %v2719_v47 = vld [vmem:[#allocation19_spill] sm:$0xff] }
 0x331   : > { %v1073_v43 = vpack.c.bf16 %v1025_v50, %v1023_v38  ;;  %v1072_v6 = vpack.c.bf16 %v1024_v3, %v1022_v36  ;;  %v2720_v50 = vld [vmem:[#allocation20_spill] sm:$0xff] }
 0x332   : > { %v1587_v29 = vpop.eup %1586 }
 0x333   : > { %v925_v14 = vpop.xlane.xlu1 %924  ;;  %1112 = vmatprep.subr.bf16.mxu1 %v1073_v43  ;;  %v1027_v13 = vmul.f32 %v1587_v29, %v2376_v44  ;;  %v1026_v52 = vmul.f32 %v1587_v29, %v2374_v15 }
 0x334   : > { %1592 = vrcp.f32 %v925_v14  ;;  %1113 = vmatpush1.bf16.msra.mxu1 %v1072_v6 }
 0x336   : > { %v1589_v49 = vpop.eup %1588 }
 0x337   : > { %v928_v17 = vpop.xlane.xlu0 %927  ;;  %v1029_v48 = vmul.f32 %v1589_v49, %v2386_v10  ;;  %v1028_v9 = vmul.f32 %v1589_v49, %v2382_v0 }
 0x338   : > { %1594 = vrcp.f32 %v928_v17 }
 0x339   : > { %v1075_v12 = vpack.c.bf16 %v1029_v48, %v1027_v13  ;;  %v1074_v28 = vpack.c.bf16 %v1028_v9, %v1026_v52 }
 0x33a   : > { %v931_v51 = vpop.xlane.xlu1 %930  ;;  %v1591_v30 = vpop.eup %1590 }
 0x33b   : > { %1596 = vrcp.f32 %v931_v51  ;;  %1114 = vmatprep.subr.bf16.mxu1 %v1075_v12  ;;  %v1031_v32 = vmul.f32 %v1591_v30, %v2392_v53  ;;  %v1030_v10 = vmul.f32 %v1591_v30, %v2390_v31 }
 0x33c   : > { %1115 = vmatpush1.bf16.msra.mxu1 %v1074_v28 }
 0x33e   : > { %v1593_v1 = vpop.eup %1592 }
 0x33f   : > { %v934_v5 = vpop.xlane.xlu0 %933  ;;  %v1033_v44 = vmul.f32 %v1593_v1, %v2402_v16  ;;  %v1032_v15 = vmul.f32 %v1593_v1, %v2398_v34  ;;  %v2714_v16 = vld [vmem:[#allocation28_spill] sm:$0xff]  ;;  %v2721_v1 = vld [vmem:[#allocation23_spill] sm:$0xff] }
 0x340   : > { %1598 = vrcp.f32 %v934_v5  ;;  %v2722_v5 = vld [vmem:[#allocation21_spill] sm:$0xff] }
 0x341   : > { %v1077_v0 = vpack.c.bf16 %v1033_v44, %v1031_v32  ;;  %v1076_v42 = vpack.c.bf16 %v1032_v15, %v1030_v10  ;;  %v2723_v32 = vld [vmem:[#allocation22_spill] sm:$0xff] }
 0x342   : > { %v937_v35 = vpop.xlane.xlu1 %936  ;;  %v1595_v18 = vpop.eup %1594 }
 0x343   : > { %1600 = vrcp.f32 %v937_v35  ;;  %1116 = vmatprep.subr.bf16.mxu1 %v1077_v0  ;;  %v1035_v27 = vmul.f32 %v1595_v18, %v2408_v56  ;;  %v1034_v53 = vmul.f32 %v1595_v18, %v2406_v24  ;;  %v2724_v0 = vld [vmem:[#allocation25_spill] sm:$0xff]  ;;  %v2725_v35 = vld [vmem:[#allocation27_spill] sm:$0xff] }
 0x344   : > { %1117 = vmatpush1.bf16.msra.mxu1 %v1076_v42 }
 0x345   : > { %v1597_v60 = vpop.eup %1596 }
 0x346   : > { %v1037_v8 = vmul.f32 %v1597_v60, %v2416_v21  ;;  %v1036_v59 = vmul.f32 %v1597_v60, %v2714_v16  ;;  %v2726_v60 = vld [vmem:[#allocation24_spill] sm:$0xff] }
 0x347   : > { %v940_v31 = vpop.xlane.xlu0 %939 }
 0x348   : > { %v1079_v63 = vpack.c.bf16 %v1037_v8, %v1035_v27  ;;  %v1078_v34 = vpack.c.bf16 %v1036_v59, %v1034_v53  ;;  %1602 = vrcp.f32 %v940_v31  ;;  %v2727_v27 = vld [vmem:[#allocation26_spill] sm:$0xff]  ;;  %v2728_v59 = vld [vmem:[#allocation29_spill] sm:$0xff] }
 0x349   : > { %v1336_v31 = vcombine.low %v2728_v59, %v2728_v59 }
 0x34a   : > { %v943_v55 = vpop.xlane.xlu1 %942  ;;  %1118 = vmatprep.subr.bf16.mxu1 %v1079_v63  ;;  %v1599_v26 = vpop.eup %1598 }
 0x34b   : > { %1604 = vrcp.f32 %v943_v55  ;;  %1119 = vmatpush1.bf16.msra.mxu1 %v1078_v34  ;;  %v1039_v37 = vmul.f32 %v1599_v26, %v2715_v23  ;;  %v1038_v21 = vmul.f32 %v1599_v26, %v2717_v19 }
 0x34d   : > { %v1601_v25 = vpop.eup %1600 }
 0x34e   : > { %v1041_v56 = vmul.f32 %v1601_v25, %v2716_v40  ;;  %v1040_v24 = vmul.f32 %v1601_v25, %v2718_v7 }
 0x34f   : > { %v946_v11 = vpop.xlane.xlu0 %945 }
 0x350   : > { %v1081_v41 = vpack.c.bf16 %v1041_v56, %v1039_v37  ;;  %v1080_v61 = vpack.c.bf16 %v1040_v24, %v1038_v21  ;;  %1606 = vrcp.f32 %v946_v11 }
 0x352   : > { %v949_v58 = vpop.xlane.xlu1 %948  ;;  %1120 = vmatprep.subr.bf16.mxu1 %v1081_v41  ;;  %v1603_v62 = vpop.eup %1602 }
 0x353   : > { %1608 = vrcp.f32 %v949_v58  ;;  %1121 = vmatpush1.bf16.msra.mxu1 %v1080_v61  ;;  %v1043_v33 = vmul.f32 %v1603_v62, %v2440_v20  ;;  %v1042_v38 = vmul.f32 %v1603_v62, %v2719_v47 }
 0x355   : > { %v1605_v57 = vpop.eup %1604 }
 0x356   : > { %v1045_v39 = vmul.f32 %v1605_v57, %v2448_v54  ;;  %v1044_v36 = vmul.f32 %v1605_v57, %v2720_v50 }
 0x357   : > { %v952_v3 = vpop.xlane.xlu0 %951 }
 0x358   : > { %1610 = vrcp.f32 %v952_v3  ;;  %v1083_v43 = vpack.c.bf16 %v1045_v39, %v1043_v33  ;;  %v1082_v6 = vpack.c.bf16 %v1044_v36, %v1042_v38 }
 0x359   : > { %v955_v14 = vpop.xlane.xlu1 %954 }
 0x35a   : > { %1612 = vrcp.f32 %v955_v14  ;;  %1122 = vmatprep.subr.bf16.mxu1 %v1083_v43  ;;  %v1607_v29 = vpop.eup %1606 }
 0x35b   : > { %1123 = vmatpush1.bf16.msra.mxu1 %v1082_v6  ;;  %v1047_v17 = vmul.f32 %v1607_v29, %v2456_v22  ;;  %v1046_v54 = vmul.f32 %v1607_v29, %v2454_v2 }
 0x35d   : > { %v1609_v49 = vpop.eup %1608 }
 0x35e   : > { %v1049_v20 = vmul.f32 %v1609_v49, %v2464_v45  ;;  %v1048_v13 = vmul.f32 %v1609_v49, %v2458_v46 }
 0x35f   : > { %v958_v48 = vpop.xlane.xlu0 %957 }
 0x360   : > { %1614 = vrcp.f32 %v958_v48  ;;  %v1085_v52 = vpack.c.bf16 %v1049_v20, %v1047_v17  ;;  %v1084_v9 = vpack.c.bf16 %v1048_v13, %v1046_v54 }
 0x361   : > { %v961_v12 = vpop.xlane.xlu1 %960 }
 0x362   : > { %v1611_v28 = vpop.eup %1610  ;;  %1616 = vrcp.f32 %v961_v12  ;;  %1124 = vmatprep.subr.bf16.mxu1 %v1085_v52 }
 0x363   : > { %1125 = vmatpush1.bf16.msra.mxu1 %v1084_v9  ;;  %v1051_v30 = vmul.f32 %v1611_v28, %v2472_v4  ;;  %v1050_v45 = vmul.f32 %v1611_v28, %v2722_v5 }
 0x364   : > { %v1613_v51 = vpop.eup %1612 }
 0x365   : > { %v1053_v22 = vmul.f32 %v1613_v51, %v2721_v1  ;;  %v1052_v2 = vmul.f32 %v1613_v51, %v2723_v32 }
 0x367   : > { %v1087_v44 = vpack.c.bf16 %v1053_v22, %v1051_v30  ;;  %v1086_v46 = vpack.c.bf16 %v1052_v2, %v1050_v45 }
 0x369   : > { %1126 = vmatprep.subr.bf16.mxu1 %v1087_v44 }
 0x36a   : > { %v1615_v10 = vpop.eup %1614  ;;  %1127 = vmatpush1.bf16.msra.mxu1 %v1086_v46 }
 0x36b   : > { %v1055_v42 = vmul.f32 %v1615_v10, %v2724_v0  ;;  %v1054_v4 = vmul.f32 %v1615_v10, %v2726_v60 }
 0x36c   : > { %v1617_v15 = vpop.eup %1616 }
 0x36d   : > { %v1057_v18 = vmul.f32 %v1617_v15, %v2725_v35  ;;  %v1056_v8 = vmul.f32 %v1617_v15, %v2727_v27 }
 0x36f   : > { %v1089_v53 = vpack.c.bf16 %v1057_v18, %v1055_v42  ;;  %v1088_v16 = vpack.c.bf16 %v1056_v8, %v1054_v4 }
 0x371   : > { %1128 = vmatprep.subr.bf16.mxu1 %v1089_v53 }
 0x372   : > { %1129 = vmatpush1.bf16.msra.mxu1 %v1088_v16 }
 0x375   : > { %1131 = vmatmul.mubr.bf16.vlgmr.msra.gmra.mrb[0].mxu1 %v1336_v31 }
 0x448   : > { %v1132_v63 = vpop.f32.mrb[0].mxu1 }
 0x449   : > { %1143 = vst [vmem:[%s279_s7] sm:$0xff] %v1132_v63  ;;  %v1134_v34 = vpop.f32.mrb[1].mxu1 }
 0x44a   : > { %1144 = vst [vmem:[%s279_s7 + $0x8] sm:$0xff] %v1134_v34  ;;  %v1136_v55 = vpop.f32.mrb[2].mxu1 }
 0x44b   : > { %v1137_v26 = vpop.f32.mrb[3].mxu1 }
 0x44c   : > { %1721 = shalt.err (!%p1718_p13)
}
 0x44d   : > { %s1722_s5 = scalar_lea.hbm %s2572_s22, 256  ;;  %s1726_s8 = scalar_lea.hbm %s2622_s3, 512 }
 0x44e   : > { %p1723_p11 = scmp.ne.s32.totalorder %s2572_s22, %s1722_s5  ;;  %p1727_p7 = scmp.lt.u32.totalorder %s2572_s22, %s2622_s3 }
 0x44f   : > { %p1728_p3 = scmp.lt.u32.totalorder %s1726_s8, %s1722_s5  ;;  %p1730_p4 = scmp.lt.u32.totalorder %s1722_s5, %s2572_s22 }
 0x450   : > { %p1724_p2 = pnand %p1723_p11, %p2729_p10 }
 0x451   : > { %p1729_p0 = por %p1728_p3, %p1727_p7 }
 0x452   : > { %p1725_p5 = pneg %p1724_p2 }
 0x453   : > { %p1731_p12 = por %p1730_p4, %p1729_p0 }
 0x455   : > { %p1732_p1 = pnand %p1731_p12, %p1725_p5 }
 0x457   : > { %1735 = shalt.err (!%p1732_p1)
}
 0x458   : > { %1353 = dma.vmem_to_hbm [thread:$0]  (%p2729_p10), %s2567_s20, 256, %s2572_s22, %s1156_s28  }
 0x459 PF: > { %s1182_s4 = sand.u32 1, %s1774_s12   ;;  %p2730_p8 = scmp.ne.s32.totalorder %s2663_s27, 0 }
 0x45a   : > { %p2731_p9 = scmp.ge.s32.totalorder %s1794_s17, 2  ;;  %s1183_s11 = scalar_lea.sflag [#allocation4], %s1182_s4 }
 0x45c   : > { %p1366_p6 = pnand %p2731_p9, %p2730_p8 }
 0x45e   : > { %1769 = dma.done.wait (!%p1366_p6), %s1183_s11, 256  }
 0x45f   : > { %1771 = vsyncadd (!%p1366_p6), %s1183_s11, 4294967040  ;;  %s22_s17 = sadd.s32 1, %s1794_s17   ;;  %s2732_s25 = sld [smem:[#allocation14_spill]] }
 0x460   : > { %p19_p13 = scmp.ge.s32.totalorder %s22_s17, 4   ;;  %s2733_s15 = sld [smem:[#allocation12_spill]] }
 0x461   : > { %s2734_s16 = sld [smem:[#allocation13_spill]]  ;;  %s2735_s12 = smov %s1778_s13 }
 0x462   : > { %s2736_s13 = smov %s1782_s14  ;;  %21 = sbr.rel (!%p19_p13) target bundleno = 10 (0xa), region = 109 }
 0x465   : > { %s2737_s14 = smov %s2732_s25 }
 0x469   :  { %1188 = vsyncpa [#allocation3], 1 }
 0x46a   :  { %1190 = vsyncpa [#allocation3 + $0x1], 1 }
 0x46b   :  { %1191 = vsyncpa [#allocation6], 1 }
 0x46c   :  { %1193 = vsyncpa [#allocation6 + $0x1], 1 }
 0x46d   :  { %1194 = vsyncpa [#allocation4], 1 }
 0x46e   :  { %1196 = vsyncpa [#allocation4 + $0x1], 1 }

</bundles_post_ra>
